<compile_context>
chip_gen: v6e
topology: v6e:2x2x1
jax: 0.10.0
libtpu: 0.0.40
codegen_flags: <defaults>
</compile_context>

<pallas_src>
import math
from functools import partial

import jax
import jax.numpy as jnp
from jax import lax
from jax.experimental import pallas as pl
from jax.experimental.pallas import tpu as pltpu
import numpy as np


def _round_up(a, b):
    return -(-a // b) * b


# ----------------------------- Pallas kernel ------------------------------ #
def _make_multitexture_kernel(map_shapes, offsets, T, tile_p, use_bf16_weights):
    """map_shapes: list of (H_i, W_i); offsets: flat start row of each map."""
    w_dtype = jnp.bfloat16 if use_bf16_weights else jnp.float32

    def kernel(pk_ref, tex_ref, out_ref):
        # packed input rows: 0 = grid x, 1 = grid y, 2 = map index (as f32)
        pk = pk_ref[0]                       # (3, tile_p) f32
        x = pk[0:1, :]                       # (1, tile_p), x in [-1, 1]
        y = pk[1:2, :]                       # (1, tile_p), y in [-1, 1]
        m = pk[2:3, :]                       # (1, tile_p), map index

        # ---- cheap (1, tile_p) per-pixel map-parameter selection ---------- #
        fz = jnp.zeros((1, tile_p), jnp.float32)
        iz = jnp.zeros((1, tile_p), jnp.int32)
        wm1, hm1, valid = fz, fz, fz
        off_i, wi_i = iz, iz
        for i, (Hi, Wi) in enumerate(map_shapes):
            sel = m == float(i)
            wm1 = jnp.where(sel, float(Wi - 1), wm1)        # W_i - 1
            hm1 = jnp.where(sel, float(Hi - 1), hm1)        # H_i - 1
            off_i = jnp.where(sel, int(offsets[i]), off_i)  # flat texel offset
            wi_i = jnp.where(sel, Wi, wi_i)                 # row stride
            valid = jnp.where(sel, 1.0, valid)              # idx matched a map

        # ---- bilinear corner coords / weights, computed once -------------- #
        # align_corners=True unnormalization + border clamp
        ix = jnp.clip((x + 1.0) * 0.5 * wm1, 0.0, wm1)
        iy = jnp.clip((y + 1.0) * 0.5 * hm1, 0.0, hm1)
        x0f = jnp.floor(ix)
        y0f = jnp.floor(iy)
        wx1 = ix - x0f
        wx0 = 1.0 - wx1
        wy1 = iy - y0f
        wy0 = 1.0 - wy1
        x0 = x0f.astype(jnp.int32)
        y0 = y0f.astype(jnp.int32)
        x1 = jnp.minimum(x0 + 1, wm1.astype(jnp.int32))  # OOB corner has w=0
        y1 = jnp.minimum(y0 + 1, hm1.astype(jnp.int32))

        # ---- 4 full (T, tile_p) one-hot sweeps (was 4 * num_maps) --------- #
        row_ids = lax.broadcasted_iota(jnp.int32, (T, tile_p), 0)
        wmat = jnp.zeros((T, tile_p), w_dtype)
        zero = jnp.zeros((), w_dtype)
        for yy, xx, wgt in ((y0, x0, wy0 * wx0), (y0, x1, wy0 * wx1),
                            (y1, x0, wy1 * wx0), (y1, x1, wy1 * wx1)):
            flat = off_i + yy * wi_i + xx                    # (1, tile_p) i32
            w = (valid * wgt).astype(w_dtype)                # (1, tile_p)
            wmat = wmat + jnp.where(row_ids == flat, w, zero)

        # (C, T) @ (T, tile_p) -> (C, tile_p) on the MXU
        res = jnp.dot(tex_ref[...], wmat, preferred_element_type=jnp.float32)
        out_ref[...] = res[None].astype(out_ref.dtype)

    return kernel


# ------------------------------- wrapper ----------------------------------- #
def multi_texture_forward(texture_maps, uv_coords, uv_idcs, *,
                          max_tile_p=1024, use_bf16_weights=False):
    """texture_maps: list of (C, H_i, W_i) arrays.
    uv_coords: (N, H, W, 2) in [-1, 1].  uv_idcs: (N, H, W) int.
    Returns (N, C, H, W) with the dtype of uv_coords (PyTorch NCHW)."""
    C = texture_maps[0].shape[0]
    map_shapes = [(int(t.shape[1]), int(t.shape[2])) for t in texture_maps]
    sizes = [h * w for h, w in map_shapes]
    offsets = np.cumsum([0] + sizes)[:-1]
    T = int(sum(sizes))

    tex_dtype = jnp.bfloat16 if use_bf16_weights else jnp.float32
    # (C, T) flattened texture slab (resident in VMEM for the whole kernel).
    tex_flat = jnp.concatenate(
        [t.reshape(C, -1) for t in texture_maps], axis=1).astype(tex_dtype)

    N, H, W, _ = uv_coords.shape
    HW = H * W
    out_dtype = uv_coords.dtype

    # Lane-dense pixel tile: multiple of 256 (MXU lane width on v6e/v7x),
    # as large as useful, but keep the (T, tile_p) weight matrix + temps and
    # the double-buffered texture slab well inside a conservative VMEM budget
    # (sized for v7x's 64 MiB/TC, default 32 MiB scoped window).
    vmem_budget = 16 * 1024 * 1024
    tile_p = max(256, min(_round_up(max_tile_p, 256), _round_up(HW, 256)))
    while tile_p > 256 and (4 * T * tile_p * 4 + 2 * C * T * 4) > vmem_budget:
        tile_p -= 256
    HWp = _round_up(HW, tile_p)
    bpb = HWp // tile_p                      # pixel blocks per batch element

    # Pack (x, y, idx-as-float) into one (N, 3, HWp) array: single input DMA
    # per grid step instead of three.  Padding uses idx = -1 -> zero output.
    ux = uv_coords[..., 0].reshape(N, HW).astype(jnp.float32)
    uy = uv_coords[..., 1].reshape(N, HW).astype(jnp.float32)
    idxf = uv_idcs.reshape(N, HW).astype(jnp.float32)
    packed = jnp.stack([ux, uy, idxf], axis=1)               # (N, 3, HW)
    if HWp != HW:
        packed = jnp.pad(packed, ((0, 0), (0, 0), (0, HWp - HW)),
                         constant_values=-1.0)

    kernel = _make_multitexture_kernel(map_shapes, offsets, T, tile_p,
                                       use_bf16_weights)

    out = pl.pallas_call(
        kernel,
        out_shape=jax.ShapeDtypeStruct((N, C, HWp), out_dtype),
        grid=(N, bpb),
        in_specs=[
            pl.BlockSpec((1, 3, tile_p), lambda n, i: (n, 0, i)),  # packed uv
            # Resident texture slab (constant index_map -> DMA'd once; for
            # production-size T this should be single-buffered / gathered).
            pl.BlockSpec((C, T), lambda n, i: (0, 0)),
        ],
        out_specs=pl.BlockSpec((1, C, tile_p), lambda n, i: (n, 0, i)),
        compiler_params=pltpu.CompilerParams(
            dimension_semantics=("parallel", "parallel")),
    )(packed, tex_flat)

    # (N, C, HWp) -> (N, C, H, W): slice off padding + free reshape, no transpose.
    return out[:, :, :HW].reshape(N, C, H, W)


# ------------------------ pure-JAX reference (check) ----------------------- #
def multi_texture_reference(texture_maps, uv_coords, uv_idcs):
    N, H, W, _ = uv_coords.shape
    C = texture_maps[0].shape[0]
    out = jnp.zeros((N, H, W, C), uv_coords.dtype)
    for i, t in enumerate(texture_maps):
        _, Hi, Wi = t.shape
        x = jnp.clip((uv_coords[..., 0] + 1.0) * 0.5 * (Wi - 1), 0.0, Wi - 1)
        y = jnp.clip((uv_coords[..., 1] + 1.0) * 0.5 * (Hi - 1), 0.0, Hi - 1)
        x0 = jnp.floor(x).astype(jnp.int32)
        y0 = jnp.floor(y).astype(jnp.int32)
        x1 = jnp.minimum(x0 + 1, Wi - 1)
        y1 = jnp.minimum(y0 + 1, Hi - 1)
        wx1 = x - x0
        wx0 = 1.0 - wx1
        wy1 = y - y0
        wy0 = 1.0 - wy1

        def g(yy, xx):
            return jnp.transpose(t[:, yy, xx], (1, 2, 3, 0))   # (N,H,W,C)

        samp = (g(y0, x0) * (wy0 * wx0)[..., None]
                + g(y0, x1) * (wy0 * wx1)[..., None]
                + g(y1, x0) * (wy1 * wx0)[..., None]
                + g(y1, x1) * (wy1 * wx1)[..., None])
        out = jnp.where((uv_idcs == i)[..., None], samp, out)
    return jnp.transpose(out, (0, 3, 1, 2))


# ---------------------------------- main ----------------------------------- #
if __name__ == "__main__":
    key = jax.random.PRNGKey(0)
    k_t0, k_t1, k_uv, k_idx = jax.random.split(key, 4)

    C = 4
    # deterministic "parameters": two texture maps with different resolutions
    tex0 = jax.random.normal(k_t0, (C, 16, 16), dtype=jnp.float32)
    tex1 = jax.random.normal(k_t1, (C, 8, 8), dtype=jnp.float32)
    texture_maps = [tex0, tex1]

    N, H, W = 2, 16, 16
    uv_coords = jax.random.uniform(k_uv, (N, H, W, 2), jnp.float32,
                                   minval=-1.1, maxval=1.1)  # exercise border clamp
    uv_idcs = jax.random.randint(k_idx, (N, H, W), 0, len(texture_maps),
                                 dtype=jnp.int32)

    out = multi_texture_forward(texture_maps, uv_coords, uv_idcs)
    out = jax.block_until_ready(out)

    ref = multi_texture_reference(texture_maps, uv_coords, uv_idcs)
    assert out.shape == (N, C, H, W), out.shape
    assert out.dtype == uv_coords.dtype, out.dtype
    np.testing.assert_allclose(np.asarray(out), np.asarray(ref),
                               atol=1e-5, rtol=1e-5)
    print("KERNEL_OK")
</pallas_src>

<mosaic_0001>
module attributes {stable_mosaic.version = 11 : i64} {
  func.func @kernel(%arg0: i32, %arg1: i32, %arg2: memref<1x3x256xf32, #tpu.memory_space<vmem>>, %arg3: memref<4x320xf32, #tpu.memory_space<vmem>>, %arg4: memref<1x4x256xf32, #tpu.memory_space<vmem>>) attributes {dimension_semantics = [#tpu.dimension_semantics<parallel>, #tpu.dimension_semantics<parallel>], iteration_bounds = array<i64: 2, 1>, scalar_prefetch = 0 : i64, scratch_operands = 0 : i64, tpu.core_type = #tpu.core_type<tc>, window_params = [{transform_indices = @transform_0, window_bounds = array<i64: 1, 3, 256>}, {pipeline_mode = #tpu.pipeline_mode<synchronous>, transform_indices = @transform_1, window_bounds = array<i64: 4, 320>}, {transform_indices = @transform_2, window_bounds = array<i64: 1, 4, 256>}]} {
    %c0 = arith.constant 0 : index
    %c0_0 = arith.constant 0 : index
    %c0_1 = arith.constant 0 : index
    %0 = vector.load %arg2[%c0, %c0_0, %c0_1] : memref<1x3x256xf32, #tpu.memory_space<vmem>>, vector<1x3x256xf32>
    %1 = vector.shape_cast %0 : vector<1x3x256xf32> to vector<3x256xf32>
    %2 = vector.extract_strided_slice %1 {offsets = [0, 0], sizes = [1, 256], strides = [1, 1]} : vector<3x256xf32> to vector<1x256xf32>
    %3 = vector.extract_strided_slice %1 {offsets = [1, 0], sizes = [1, 256], strides = [1, 1]} : vector<3x256xf32> to vector<1x256xf32>
    %4 = vector.extract_strided_slice %1 {offsets = [2, 0], sizes = [1, 256], strides = [1, 1]} : vector<3x256xf32> to vector<1x256xf32>
    %cst = arith.constant 0.000000e+00 : f32
    %5 = vector.broadcast %cst : f32 to vector<1x256xf32>
    %c0_i32 = arith.constant 0 : i32
    %6 = vector.broadcast %c0_i32 : i32 to vector<1x256xi32>
    %cst_2 = arith.constant 0.000000e+00 : f32
    %7 = vector.broadcast %cst_2 : f32 to vector<1x256xf32>
    %8 = arith.cmpf oeq, %4, %7 : vector<1x256xf32>
    %cst_3 = arith.constant 1.500000e+01 : f32
    %9 = vector.broadcast %cst_3 : f32 to vector<1x256xf32>
    %10 = arith.select %8, %9, %5 : vector<1x256xi1>, vector<1x256xf32>
    %cst_4 = arith.constant 1.500000e+01 : f32
    %11 = vector.broadcast %cst_4 : f32 to vector<1x256xf32>
    %12 = arith.select %8, %11, %5 : vector<1x256xi1>, vector<1x256xf32>
    %c0_i32_5 = arith.constant 0 : i32
    %13 = vector.broadcast %c0_i32_5 : i32 to vector<1x256xi32>
    %14 = arith.select %8, %13, %6 : vector<1x256xi1>, vector<1x256xi32>
    %c16_i32 = arith.constant 16 : i32
    %15 = vector.broadcast %c16_i32 : i32 to vector<1x256xi32>
    %16 = arith.select %8, %15, %6 : vector<1x256xi1>, vector<1x256xi32>
    %cst_6 = arith.constant 1.000000e+00 : f32
    %17 = vector.broadcast %cst_6 : f32 to vector<1x256xf32>
    %18 = arith.select %8, %17, %5 : vector<1x256xi1>, vector<1x256xf32>
    %cst_7 = arith.constant 1.000000e+00 : f32
    %19 = vector.broadcast %cst_7 : f32 to vector<1x256xf32>
    %20 = arith.cmpf oeq, %4, %19 : vector<1x256xf32>
    %cst_8 = arith.constant 7.000000e+00 : f32
    %21 = vector.broadcast %cst_8 : f32 to vector<1x256xf32>
    %22 = arith.select %20, %21, %10 : vector<1x256xi1>, vector<1x256xf32>
    %cst_9 = arith.constant 7.000000e+00 : f32
    %23 = vector.broadcast %cst_9 : f32 to vector<1x256xf32>
    %24 = arith.select %20, %23, %12 : vector<1x256xi1>, vector<1x256xf32>
    %c256_i32 = arith.constant 256 : i32
    %25 = vector.broadcast %c256_i32 : i32 to vector<1x256xi32>
    %26 = arith.select %20, %25, %14 : vector<1x256xi1>, vector<1x256xi32>
    %c8_i32 = arith.constant 8 : i32
    %27 = vector.broadcast %c8_i32 : i32 to vector<1x256xi32>
    %28 = arith.select %20, %27, %16 : vector<1x256xi1>, vector<1x256xi32>
    %cst_10 = arith.constant 1.000000e+00 : f32
    %29 = vector.broadcast %cst_10 : f32 to vector<1x256xf32>
    %30 = arith.select %20, %29, %18 : vector<1x256xi1>, vector<1x256xf32>
    %cst_11 = arith.constant 1.000000e+00 : f32
    %31 = vector.broadcast %cst_11 : f32 to vector<1x256xf32>
    %32 = arith.addf %2, %31 : vector<1x256xf32>
    %cst_12 = arith.constant 5.000000e-01 : f32
    %33 = vector.broadcast %cst_12 : f32 to vector<1x256xf32>
    %34 = arith.mulf %32, %33 : vector<1x256xf32>
    %35 = arith.mulf %34, %22 : vector<1x256xf32>
    %cst_13 = arith.constant 0.000000e+00 : f32
    %36 = vector.broadcast %cst_13 : f32 to vector<1x256xf32>
    %37 = arith.maximumf %36, %35 : vector<1x256xf32>
    %38 = arith.minimumf %22, %37 : vector<1x256xf32>
    %cst_14 = arith.constant 1.000000e+00 : f32
    %39 = vector.broadcast %cst_14 : f32 to vector<1x256xf32>
    %40 = arith.addf %3, %39 : vector<1x256xf32>
    %cst_15 = arith.constant 5.000000e-01 : f32
    %41 = vector.broadcast %cst_15 : f32 to vector<1x256xf32>
    %42 = arith.mulf %40, %41 : vector<1x256xf32>
    %43 = arith.mulf %42, %24 : vector<1x256xf32>
    %cst_16 = arith.constant 0.000000e+00 : f32
    %44 = vector.broadcast %cst_16 : f32 to vector<1x256xf32>
    %45 = arith.maximumf %44, %43 : vector<1x256xf32>
    %46 = arith.minimumf %24, %45 : vector<1x256xf32>
    %47 = math.floor %38 : vector<1x256xf32>
    %48 = math.floor %46 : vector<1x256xf32>
    %49 = arith.subf %38, %47 : vector<1x256xf32>
    %cst_17 = arith.constant 1.000000e+00 : f32
    %50 = vector.broadcast %cst_17 : f32 to vector<1x256xf32>
    %51 = arith.subf %50, %49 : vector<1x256xf32>
    %52 = arith.subf %46, %48 : vector<1x256xf32>
    %cst_18 = arith.constant 1.000000e+00 : f32
    %53 = vector.broadcast %cst_18 : f32 to vector<1x256xf32>
    %54 = arith.subf %53, %52 : vector<1x256xf32>
    %55 = arith.fptosi %47 : vector<1x256xf32> to vector<1x256xi32>
    %56 = arith.fptosi %48 : vector<1x256xf32> to vector<1x256xi32>
    %c1_i32 = arith.constant 1 : i32
    %57 = vector.broadcast %c1_i32 : i32 to vector<1x256xi32>
    %58 = arith.addi %55, %57 : vector<1x256xi32>
    %59 = arith.fptosi %22 : vector<1x256xf32> to vector<1x256xi32>
    %60 = arith.minsi %58, %59 : vector<1x256xi32>
    %c1_i32_19 = arith.constant 1 : i32
    %61 = vector.broadcast %c1_i32_19 : i32 to vector<1x256xi32>
    %62 = arith.addi %56, %61 : vector<1x256xi32>
    %63 = arith.fptosi %24 : vector<1x256xf32> to vector<1x256xi32>
    %64 = arith.minsi %62, %63 : vector<1x256xi32>
    %65 = tpu.iota {dimensions = array<i32: 0>} : vector<320x256xi32>
    %cst_20 = arith.constant 0.000000e+00 : f32
    %66 = vector.broadcast %cst_20 : f32 to vector<320x256xf32>
    %67 = arith.mulf %54, %51 : vector<1x256xf32>
    %68 = arith.mulf %54, %49 : vector<1x256xf32>
    %69 = arith.mulf %52, %51 : vector<1x256xf32>
    %70 = arith.mulf %52, %49 : vector<1x256xf32>
    %71 = arith.muli %56, %28 : vector<1x256xi32>
    %72 = arith.addi %26, %71 : vector<1x256xi32>
    %73 = arith.addi %72, %55 : vector<1x256xi32>
    %74 = arith.mulf %30, %67 : vector<1x256xf32>
    %75 = vector.broadcast %73 : vector<1x256xi32> to vector<320x256xi32>
    %76 = arith.cmpi eq, %65, %75 : vector<320x256xi32>
    %cst_21 = arith.constant 0.000000e+00 : f32
    %77 = vector.shape_cast %74 : vector<1x256xf32> to vector<1x256xf32>
    %78 = vector.broadcast %77 : vector<1x256xf32> to vector<320x256xf32>
    %79 = vector.broadcast %cst_21 : f32 to vector<320x256xf32>
    %80 = arith.select %76, %78, %79 : vector<320x256xi1>, vector<320x256xf32>
    %81 = arith.addf %66, %80 : vector<320x256xf32>
    %82 = arith.muli %56, %28 : vector<1x256xi32>
    %83 = arith.addi %26, %82 : vector<1x256xi32>
    %84 = arith.addi %83, %60 : vector<1x256xi32>
    %85 = arith.mulf %30, %68 : vector<1x256xf32>
    %86 = vector.broadcast %84 : vector<1x256xi32> to vector<320x256xi32>
    %87 = arith.cmpi eq, %65, %86 : vector<320x256xi32>
    %cst_22 = arith.constant 0.000000e+00 : f32
    %88 = vector.shape_cast %85 : vector<1x256xf32> to vector<1x256xf32>
    %89 = vector.broadcast %88 : vector<1x256xf32> to vector<320x256xf32>
    %90 = vector.broadcast %cst_22 : f32 to vector<320x256xf32>
    %91 = arith.select %87, %89, %90 : vector<320x256xi1>, vector<320x256xf32>
    %92 = arith.addf %81, %91 : vector<320x256xf32>
    %93 = arith.muli %64, %28 : vector<1x256xi32>
    %94 = arith.addi %26, %93 : vector<1x256xi32>
    %95 = arith.addi %94, %55 : vector<1x256xi32>
    %96 = arith.mulf %30, %69 : vector<1x256xf32>
    %97 = vector.broadcast %95 : vector<1x256xi32> to vector<320x256xi32>
    %98 = arith.cmpi eq, %65, %97 : vector<320x256xi32>
    %cst_23 = arith.constant 0.000000e+00 : f32
    %99 = vector.shape_cast %96 : vector<1x256xf32> to vector<1x256xf32>
    %100 = vector.broadcast %99 : vector<1x256xf32> to vector<320x256xf32>
    %101 = vector.broadcast %cst_23 : f32 to vector<320x256xf32>
    %102 = arith.select %98, %100, %101 : vector<320x256xi1>, vector<320x256xf32>
    %103 = arith.addf %92, %102 : vector<320x256xf32>
    %104 = arith.muli %64, %28 : vector<1x256xi32>
    %105 = arith.addi %26, %104 : vector<1x256xi32>
    %106 = arith.addi %105, %60 : vector<1x256xi32>
    %107 = arith.mulf %30, %70 : vector<1x256xf32>
    %108 = vector.broadcast %106 : vector<1x256xi32> to vector<320x256xi32>
    %109 = arith.cmpi eq, %65, %108 : vector<320x256xi32>
    %cst_24 = arith.constant 0.000000e+00 : f32
    %110 = vector.shape_cast %107 : vector<1x256xf32> to vector<1x256xf32>
    %111 = vector.broadcast %110 : vector<1x256xf32> to vector<320x256xf32>
    %112 = vector.broadcast %cst_24 : f32 to vector<320x256xf32>
    %113 = arith.select %109, %111, %112 : vector<320x256xi1>, vector<320x256xf32>
    %114 = arith.addf %103, %113 : vector<320x256xf32>
    %c0_25 = arith.constant 0 : index
    %c0_26 = arith.constant 0 : index
    %115 = vector.load %arg3[%c0_25, %c0_26] : memref<4x320xf32, #tpu.memory_space<vmem>>, vector<4x320xf32>
    %cst_27 = arith.constant dense<0.000000e+00> : vector<4x256xf32>
    %116 = tpu.matmul %115, %114, %cst_27 {dimension_numbers = #tpu.dot_dimension_numbers<[1], [0], [0], [1], [0, 0, 1, 1], [], []>} : vector<4x320xf32>, vector<320x256xf32>, vector<4x256xf32> -> vector<4x256xf32>
    %117 = vector.shape_cast %116 : vector<4x256xf32> to vector<1x4x256xf32>
    %c0_28 = arith.constant 0 : index
    %c0_29 = arith.constant 0 : index
    %c0_30 = arith.constant 0 : index
    %118 = vector.load %arg4[%c0_28, %c0_29, %c0_30] : memref<1x4x256xf32, #tpu.memory_space<vmem>>, vector<1x4x256xf32>
    tpu.vector_store %arg4[%c0_28, %c0_29, %c0_30], %117 {strides = array<i32>} : memref<1x4x256xf32, #tpu.memory_space<vmem>>, vector<1x4x256xf32>,
    return
  }
  func.func @transform_0(%arg0: i32, %arg1: i32) -> (i32, i32, i32) {
    %c0_i32 = arith.constant 0 : i32
    %c0_i32_0 = arith.constant 0 : i32
    return %arg0, %c0_i32, %arg1 : i32, i32, i32
  }
  func.func @transform_1(%arg0: i32, %arg1: i32) -> (i32, i32) {
    %c0_i32 = arith.constant 0 : i32
    %c0_i32_0 = arith.constant 0 : i32
    %c0_i32_1 = arith.constant 0 : i32
    return %c0_i32, %c0_i32_0 : i32, i32
  }
  func.func @transform_2(%arg0: i32, %arg1: i32) -> (i32, i32, i32) {
    %c0_i32 = arith.constant 0 : i32
    %c0_i32_0 = arith.constant 0 : i32
    return %arg0, %c0_i32, %arg1 : i32, i32, i32
  }
}

</mosaic_0001>

<bundles_post_ra>
// kernel: tpu_custom_call.1
= control target key start
LH: loop header
LB: loop body
LE: loop exit
PB: predicated region body
PF: predicated region fallthrough
CT: control target
= control target key end

     0   :  { %7 = vsyncpa [#allocation3], 0  ;;  %s2979_s0 = inlined_call_operand.vmem [shape: f32[2,3,256], index: 0, kind: input, shape index: {}]   ;;  %s2980_s1 = inlined_call_operand.vmem [shape: f32[4,320], index: 1, kind: input, shape index: {}]   ;;  %s2981_s2 = inlined_call_operand.hbm [shape: f32[2,4,256], index: 2, kind: output, shape index: {}]  }
   0x1   :  { %9 = vsyncpa [#allocation3 + $0x1], 0  ;;  %s1803_s9 = smov 0   ;;  %s1805_s10 = smov 0  }
   0x2   :  { %s1807_s11 = smov 0   ;;  %s1809_s12 = smov 0  }
   0x3   :  { %s1811_s13 = smov 0   ;;  %s1813_s14 = smov 0  }
   0x4 LB: > { %s1625_s15 = sadd.s32 4294967295, %s1783_s14   ;;  %s1626_s16 = sadd.s32 4294967294, %s1783_s14   ;;  %s1783_s14 = sphi %s1813_s14, %s15_s14   ;;  %s1779_s13 = sphi %s1811_s13, %s2988_s13   ;;  %s1775_s12 = sphi %s1809_s12, %s2987_s12   ;;  %s1771_s11 = sphi %s1807_s11, %s2986_s11   ;;  %s1767_s10 = sphi %s1805_s10, %s2985_s10   ;;  %s1763_s9 = sphi %s1803_s9, %s2984_s9  }
   0x5   : > { %s27_s17 = sadd.s32 1, %s1779_s13  ;;  %s85_s18 = sadd.s32 1, %s1771_s11 }
   0x6   : > { %p29_p0 = scmp.ge.s32.totalorder %s27_s17, 2  ;;  %p95_p1 = scmp.ne.s32.totalorder %s1771_s11, %s1767_s10 }
   0x7   : > { %p96_p2 = scmp.eq.s32.totalorder %s1625_s15, 1  ;;  %p101_p3 = scmp.ne.s32.totalorder %s1767_s10, %s1763_s9 }
   0x8   : > { %s2990_s17 = smov (%p29_p0, %s27_s17), 0  ;;  %p102_p5 = scmp.eq.s32.totalorder %s1626_s16, 1 }
   0x9   : > { %p1843_p4 = por %p96_p2, %p95_p1  ;;  %s80_s20 = ssub.s32 %s1779_s13, %s2990_s17 }
   0xa   : > { %p1629_p6 = scmp.ge.s32.totalorder %s1783_s14, 1  ;;  %p83_p7 = scmp.eq.s32.totalorder %s80_s20, 0 }
   0xb   : > { %p1850_p8 = por %p102_p5, %p101_p3  ;;  %p136_p9 = scmp.lt.s32.totalorder %s1783_s14, 3 }
   0xc   : > { %s1856_s22 = scalar_select %p83_p7, %s1771_s11, %s85_s18  }
   0xd   : > { %p137_p10 = pnand %p1629_p6, %p136_p9 }
   0xe   : > { %p163_p11 = scmp.lt.s32.totalorder (!%p137_p10), %s1775_s12, 1  ;;  %s159_s4 = sand.u32 (!%p137_p10), 1, %s1767_s10  }
   0xf   : > { %140 = sbr.rel (%p137_p10) target bundleno = 501 (0x1f5), region = 28  ;;  %s1630_s5 = sshll.u32 (!%p137_p10), %s159_s4, 3 }
  0x10   : > { %s1642_s6 = sshll.u32 (!%p137_p10), %s1775_s12, 7  ;;  %s161_s7 = scalar_lea.vmem (!%p137_p10), [#allocation2], %s1630_s5 }
  0x11   : > { %s1549_s8 = sshll.u32 (!%p137_p10), %s161_s7, 4  ;;  %s1547_s18 = scalar_lea.hbm (!%p137_p10), %s2981_s2, %s1642_s6  ;;  %s1550_s8 = int_to_ptr.vmem [resolvable:$true] %s1549_s8 }
  0x12   : > { %s1533_s20 = scalar_lea.sflag (!%p137_p10), [#allocation3], %s159_s4 }
  0x14   : > { %v1785_v0 = vmov 0.0   ;;  %s164_s23 = scalar_select %p163_p11, %s1775_s12, 1  ;;  %v219_v3 = vlaneseq  ;;  %v1786_v22 = vmov 0  }
  0x15   : > { %1520 = vmatprep.mubr.f32.mxu1 %v1785_v0 }
  0x16   : > { %s1641_s24 = sshll.u32 %s164_s23, 3  ;;  %v1865_v9 = vshrl.u32 %v219_v3, 7  ;;  %s1707_s23 = scalar_lea.vmem %s1550_s8, 128 }
  0x17   : > { %s170_s27 = scalar_lea.vmem %s2979_s0, %s1641_s24  ;;  %p1708_p12 = scmp.ne.s32.totalorder %s1550_s8, %s1707_s23 }
  0x18   : > { %v173_v1 = vld [vmem:[%s170_s27] sm:$0x77]  ;;  %v1868_v14 = vadd.s32 120, %v1865_v9  ;;  %v1871_v15 = vsub.s32 2, %v1865_v9  ;;  %v1874_v16 = vsub.s32 6, %v1865_v9  ;;  %v1877_v17 = vadd.s32 112, %v1865_v9 }
  0x19   : > { %vm174_vm0 = vcmp.eq.f32.partialorder %v173_v1, 0.0  ;;  %vm178_vm1 = vcmp.eq.f32.partialorder %v173_v1, 1.0  ;;  %v183_v2 = vadd.f32 1.0, %v173_v1  ;;  %v1880_v20 = vadd.s32 104, %v1865_v9  ;;  %p1709_p13 = pnand %p1708_p12, %p1843_p4  ;;  %s1787_s24 = smov [#allocation2]  }
  0x1a   : > { %v175_v4 = vsel %vm174_vm0, 15.0, %v1785_v0  ;;  %v1883_v21 = vadd.s32 96, %v1865_v9  ;;  %v176_v23 = vsel %vm174_vm0, 16, %v1786_v22  ;;  %v1887_v24 = vadd.s32 88, %v1865_v9  ;;  %s1711_s25 = sshll.u32 %s1787_s24, 4  ;;  %s1712_s25 = int_to_ptr.vmem [resolvable:$false] %s1711_s25 }
  0x1b   : > { %v179_v5 = vsel %vm178_vm1, 7.0, %v175_v4  ;;  %v184_v6 = vmul.f32 0.5, %v183_v2  ;;  %v1890_v25 = vadd.s32 80, %v1865_v9  ;;  %v1893_v26 = vadd.s32 72, %v1865_v9  ;;  %p1710_p0 = pneg %p1709_p13  ;;  %s1713_s12 = scalar_lea.vmem %s1712_s25, 256 }
  0x1c   : > { %v1633_v7 = vrot.slane %v179_v5, 10  ;;  %v1634_v8 = vrot.slane %v179_v5, 9  ;;  %v177_v27 = vsel %vm174_vm0, 1.0, %v1785_v0  ;;  %v1897_v30 = vadd.s32 64, %v1865_v9  ;;  %p1714_p1 = scmp.lt.s32.totalorder %s1550_s8, %s1712_s25  ;;  %p1715_p2 = scmp.lt.s32.totalorder %s1713_s12, %s1707_s23 }
  0x1d   : > { %v1647_v31 = vtrunc.f32 %v179_v5  ;;  %v1900_v32 = vadd.s32 56, %v1865_v9  ;;  %v1903_v33 = vadd.s32 48, %v1865_v9  ;;  %v1906_v34 = vadd.s32 40, %v1865_v9 }
  0x1e   : > { %v189_v10 = vmul.f32 %v1633_v7, %v184_v6  ;;  %v198_v11 = vmul.f32 %v1634_v8, %v184_v6  ;;  %v180_v35 = vsel %vm178_vm1, 256, %v1786_v22  ;;  %v181_v36 = vsel %vm178_vm1, 8, %v176_v23  ;;  %p1716_p3 = por %p1715_p2, %p1714_p1 }
  0x1f   : > { %v182_v39 = vsel %vm178_vm1, 1.0, %v177_v27  ;;  %v1912_v40 = vadd.s32 32, %v1865_v9  ;;  %v1915_v41 = vadd.s32 24, %v1865_v9  ;;  %v1918_v42 = vadd.s32 16, %v1865_v9 }
  0x20   : > { %v190_v12 = vmax.f32 %v189_v10, 0.0  ;;  %v199_v13 = vmax.f32 %v198_v11, 0.0  ;;  %v1648_v47 = vcvt.f32.s32 %v1647_v31  ;;  %v1921_v48 = vadd.s32 8, %v1865_v9  ;;  %p1717_p5 = pnand %p1716_p3, %p1710_p0 }
  0x21   : > { %v1924_v49 = vadd.s32 248, %v1865_v9  ;;  %v1927_v50 = vadd.s32 240, %v1865_v9  ;;  %v1930_v56 = vadd.s32 232, %v1865_v9  ;;  %v1933_v57 = vadd.s32 224, %v1865_v9 }
  0x22   : > { %v192_v18 = vrot.slane %v190_v12, 6  ;;  %v201_v19 = vrot.slane %v199_v13, 7  ;;  %v1936_v58 = vadd.s32 216, %v1865_v9  ;;  %v1941_v2 = vadd.s32 208, %v1865_v9 }
  0x24   : > { %v194_v28 = vmin.f32 %v179_v5, %v192_v18  ;;  %v203_v29 = vmin.f32 %v179_v5, %v201_v19 }
  0x26   : > { %v204_v37 = vfloor.f32 %v194_v28  ;;  %v205_v38 = vfloor.f32 %v203_v29 }
  0x28   : > { %v206_v43 = vsub.f32 %v194_v28, %v204_v37  ;;  %v208_v44 = vsub.f32 %v203_v29, %v205_v38  ;;  %v1643_v45 = vtrunc.f32 %v204_v37  ;;  %v1645_v46 = vtrunc.f32 %v205_v38 }
  0x2a   : > { %v207_v51 = vsub.f32 1.0, %v206_v43  ;;  %v209_v52 = vsub.f32 1.0, %v208_v44  ;;  %v1644_v53 = vcvt.f32.s32 %v1643_v45  ;;  %v1646_v54 = vcvt.f32.s32 %v1645_v46 }
  0x2b   : > { %v263_v55 = vmul.f32 %v208_v44, %v206_v43 }
  0x2c   : > { %v212_v59 = vadd.s32 1, %v1644_v53  ;;  %v216_v60 = vadd.s32 1, %v1646_v54  ;;  %v260_v61 = vmul.f32 %v209_v52, %v207_v51  ;;  %v261_v62 = vmul.f32 %v209_v52, %v206_v43 }
  0x2d   : > { %v262_v63 = vmul.f32 %v208_v44, %v207_v51  ;;  %v264_v0 = vmul.u32 %v1646_v54, %v181_v36  ;;  %v1938_v1 = vmul.f32 %v263_v55, %v182_v39 }
  0x2e   : > { %vm214_vm2 = vcmp.lt.s32.totalorder %v212_v59, %v1648_v47  ;;  %vm217_vm3 = vcmp.lt.s32.totalorder %v216_v60, %v1648_v47  ;;  %v267_v3 = vmul.f32 %v260_v61, %v182_v39  ;;  %v544_v4 = vmul.f32 %v261_v62, %v182_v39 }
  0x2f   : > { %v215_v5 = vsel %vm214_vm2, %v212_v59, %v1648_v47  ;;  %v218_v6 = vsel %vm217_vm3, %v216_v60, %v1648_v47  ;;  %v265_v7 = vadd.s32 %v264_v0, %v180_v35  ;;  %v823_v8 = vmul.f32 %v262_v63, %v182_v39 }
  0x30   : > { %v372_v10 = vrot.slane %v267_v3, %v1874_v16  ;;  %v649_v11 = vrot.slane %v544_v4, %v1874_v16  ;;  %v820_v12 = vmul.u32 %v218_v6, %v181_v36  ;;  %v1205_v13 = vrot.slane %v1938_v1, %v1874_v16 }
  0x31   : > { %v266_v18 = vadd.s32 %v1644_v53, %v265_v7  ;;  %v543_v19 = vadd.s32 %v265_v7, %v215_v5  ;;  %v928_v22 = vrot.slane %v823_v8, %v1874_v16  ;;  %v368_v23 = vrot.slane %v267_v3, %v1871_v15 }
  0x32   : > { %v1950_v27 = vrot.slane %v372_v10, %v1871_v15  ;;  %v1953_v28 = vrot.slane %v649_v11, %v1871_v15  ;;  %v821_v29 = vadd.s32 %v820_v12, %v180_v35  ;;  %v1956_v31 = vrot.slane %v1205_v13, %v1871_v15 }
  0x33   : > { %v275_v36 = vrot.slane %v266_v18, %v1874_v16  ;;  %v552_v37 = vrot.slane %v543_v19, %v1874_v16  ;;  %v1961_v38 = vrot.slane %v928_v22, %v1871_v15  ;;  %v271_v39 = vrot.slane %v266_v18, %v1871_v15 }
  0x34   : > { %v822_v43 = vadd.s32 %v1644_v53, %v821_v29  ;;  %v1099_v44 = vadd.s32 %v821_v29, %v215_v5  ;;  %v1965_v45 = vrot.slane %v368_v23, %v1871_v15  ;;  %v548_v46 = vrot.slane %v543_v19, %v1871_v15 }
  0x35   : > { %v1969_v35 = vrot.slane %v275_v36, %v1871_v15  ;;  %v1972_v47 = vrot.slane %v552_v37, %v1871_v15  ;;  %v1975_v51 = vrot.slane %v271_v39, %v1871_v15  ;;  %v645_v52 = vrot.slane %v544_v4, %v1871_v15 }
  0x36   : > { %v831_v54 = vrot.slane %v822_v43, %v1874_v16  ;;  %v1108_v53 = vrot.slane %v1099_v44, %v1874_v16  ;;  %v1981_v55 = vrot.slane %v548_v46, %v1871_v15  ;;  %v827_v59 = vrot.slane %v822_v43, %v1871_v15 }
  0x37   : > { %vm315_vm4 = vcmp.eq.s32.totalorder %v1868_v14, %v1969_v35  ;;  %vm592_vm5 = vcmp.eq.s32.totalorder %v1868_v14, %v1972_v47  ;;  %vm314_vm6 = vcmp.eq.s32.totalorder %v1868_v14, %v1975_v51  ;;  %v1991_v60 = vrot.slane %v645_v52, %v1871_v15 }
  0x38   : > { %v414_v61 = vsel %vm315_vm4, %v1950_v27, 0.0  ;;  %v691_v16 = vsel %vm592_vm5, %v1953_v28, 0.0  ;;  %v1996_v62 = vrot.slane %v831_v54, %v1871_v15  ;;  %v1999_v63 = vrot.slane %v1108_v53, %v1871_v15 }
  0x39   : > { %v771_v0 = vadd.f32 %v691_v16, %v414_v61  ;;  %v413_v3 = vsel %vm314_vm6, %v1965_v45, 0.0  ;;  %vm591_vm7 = vcmp.eq.s32.totalorder %v1868_v14, %v1981_v55  ;;  %v2005_v4 = vrot.slane %v827_v59, %v1871_v15 }
  0x3a   : > { %vm871_vm8 = vcmp.eq.s32.totalorder %v1868_v14, %v1996_v62  ;;  %vm1148_vm9 = vcmp.eq.s32.totalorder %v1868_v14, %v1999_v63  ;;  %v690_v5 = vsel %vm591_vm7, %v1991_v60, 0.0  ;;  %v924_v6 = vrot.slane %v823_v8, %v1871_v15 }
  0x3b   : > { %v970_v7 = vsel %vm871_vm8, %v1961_v38, 0.0  ;;  %v1247_v10 = vsel %vm1148_vm9, %v1956_v31, 0.0  ;;  %v770_v11 = vadd.f32 %v690_v5, %v413_v3  ;;  %vm870_vm10 = vcmp.eq.s32.totalorder %v1868_v14, %v2005_v4 }
  0x3c   : > { %v1050_v12 = vadd.f32 %v970_v7, %v771_v0  ;;  %v2018_v13 = vrot.slane %v924_v6, %v1871_v15  ;;  %v1104_v18 = vrot.slane %v1099_v44, %v1871_v15  ;;  %v1201_v19 = vrot.slane %v1938_v1, %v1871_v15 }
  0x3d   : > { %vm313_vm11 = vcmp.eq.s32.totalorder %v1877_v17, %v1969_v35  ;;  %vm590_vm12 = vcmp.eq.s32.totalorder %v1877_v17, %v1972_v47  ;;  %vm869_vm13 = vcmp.eq.s32.totalorder %v1877_v17, %v1996_v62  ;;  %vm1146_vm14 = vcmp.eq.s32.totalorder %v1877_v17, %v1999_v63 }
  0x3e   : > { %v1327_v8 = vadd.f32 %v1247_v10, %v1050_v12  ;;  %v969_v22 = vsel %vm870_vm10, %v2018_v13, 0.0  ;;  %v2033_v23 = vrot.slane %v1104_v18, %v1871_v15  ;;  %v2036_v1 = vrot.slane %v1201_v19, %v1871_v15 }
  0x3f   : > { %v1049_v29 = vadd.f32 %v969_v22, %v770_v11  ;;  %v412_v36 = vsel %vm313_vm11, %v1950_v27, 0.0  ;;  %v689_v37 = vsel %vm590_vm12, %v1953_v28, 0.0  ;;  %v968_v39 = vsel %vm869_vm13, %v1961_v38, 0.0 }
  0x40   : > { %1385 = vmatprep.subr.mxu0 %v1327_v8  ;;  %vm1147_vm15 = vcmp.eq.s32.totalorder %v1868_v14, %v2033_v23  ;;  %v769_v43 = vadd.f32 %v689_v37, %v412_v36  ;;  %v1245_v44 = vsel %vm1146_vm14, %v1956_v31, 0.0  ;;  %vm312_vm0 = vcmp.eq.s32.totalorder %v1877_v17, %v1975_v51 }
  0x41   : > { %v1246_v15 = vsel %vm1147_vm15, %v2036_v1, 0.0  ;;  %v411_v46 = vsel %vm312_vm0, %v1965_v45, 0.0  ;;  %vm589_vm1 = vcmp.eq.s32.totalorder %v1877_v17, %v1981_v55  ;;  %vm868_vm2 = vcmp.eq.s32.totalorder %v1877_v17, %v2005_v4 }
  0x42   : > { %v1326_v52 = vadd.f32 %v1246_v15, %v1049_v29  ;;  %v1048_v54 = vadd.f32 %v968_v39, %v769_v43  ;;  %v688_v14 = vsel %vm589_vm1, %v1991_v60, 0.0  ;;  %v967_v53 = vsel %vm868_vm2, %v2018_v13, 0.0 }
  0x43   : > { %v768_v59 = vadd.f32 %v688_v14, %v411_v46  ;;  %vm1145_vm3 = vcmp.eq.s32.totalorder %v1877_v17, %v2033_v23  ;;  %vm311_vm4 = vcmp.eq.s32.totalorder %v1880_v20, %v1969_v35  ;;  %vm588_vm5 = vcmp.eq.s32.totalorder %v1880_v20, %v1972_v47 }
  0x44   : > { %1386 = vmatpush1.msra.mxu0 %v1326_v52  ;;  %v1325_v61 = vadd.f32 %v1245_v44, %v1048_v54  ;;  %v1244_v16 = vsel %vm1145_vm3, %v2036_v1, 0.0  ;;  %v410_v0 = vsel %vm311_vm4, %v1950_v27, 0.0  ;;  %v687_v3 = vsel %vm588_vm5, %v1953_v28, 0.0 }
  0x45   : > { %v1047_v5 = vadd.f32 %v967_v53, %v768_v59  ;;  %v767_v6 = vadd.f32 %v687_v3, %v410_v0  ;;  %vm867_vm6 = vcmp.eq.s32.totalorder %v1880_v20, %v1996_v62  ;;  %vm1144_vm7 = vcmp.eq.s32.totalorder %v1880_v20, %v1999_v63 }
  0x46   : > { %1387 = vmatprep.subr.mxu0 %v1325_v61  ;;  %v966_v17 = vsel %vm867_vm6, %v1961_v38, 0.0  ;;  %v1243_v7 = vsel %vm1144_vm7, %v1956_v31, 0.0  ;;  %vm310_vm8 = vcmp.eq.s32.totalorder %v1880_v20, %v1975_v51  ;;  %vm587_vm9 = vcmp.eq.s32.totalorder %v1880_v20, %v1981_v55 }
  0x47   : > { %v1324_v10 = vadd.f32 %v1244_v16, %v1047_v5  ;;  %v1046_v11 = vadd.f32 %v966_v17, %v767_v6  ;;  %v409_v12 = vsel %vm310_vm8, %v1965_v45, 0.0  ;;  %v686_v18 = vsel %vm587_vm9, %v1991_v60, 0.0 }
  0x48   : > { %v766_v19 = vadd.f32 %v686_v18, %v409_v12  ;;  %vm866_vm10 = vcmp.eq.s32.totalorder %v1880_v20, %v2005_v4  ;;  %vm1143_vm11 = vcmp.eq.s32.totalorder %v1880_v20, %v2033_v23  ;;  %vm309_vm12 = vcmp.eq.s32.totalorder %v1883_v21, %v1969_v35 }
  0x49   : > { %1388 = vmatpush1.msra.mxu0 %v1324_v10  ;;  %v1323_v8 = vadd.f32 %v1243_v7, %v1046_v11  ;;  %v965_v22 = vsel %vm866_vm10, %v2018_v13, 0.0  ;;  %v1242_v29 = vsel %vm1143_vm11, %v2036_v1, 0.0  ;;  %v408_v36 = vsel %vm309_vm12, %v1950_v27, 0.0 }
  0x4a   : > { %v1045_v37 = vadd.f32 %v965_v22, %v766_v19  ;;  %vm586_vm13 = vcmp.eq.s32.totalorder %v1883_v21, %v1972_v47  ;;  %vm865_vm14 = vcmp.eq.s32.totalorder %v1883_v21, %v1996_v62  ;;  %vm1142_vm15 = vcmp.eq.s32.totalorder %v1883_v21, %v1999_v63 }
  0x4b   : > { %1389 = vmatprep.subr.mxu0 %v1323_v8  ;;  %v685_v20 = vsel %vm586_vm13, %v1953_v28, 0.0  ;;  %v964_v39 = vsel %vm865_vm14, %v1961_v38, 0.0  ;;  %v1241_v43 = vsel %vm1142_vm15, %v1956_v31, 0.0  ;;  %vm308_vm0 = vcmp.eq.s32.totalorder %v1883_v21, %v1975_v51 }
  0x4c   : > { %v1322_v44 = vadd.f32 %v1242_v29, %v1045_v37  ;;  %v765_v15 = vadd.f32 %v685_v20, %v408_v36  ;;  %v407_v46 = vsel %vm308_vm0, %v1965_v45, 0.0  ;;  %vm585_vm1 = vcmp.eq.s32.totalorder %v1883_v21, %v1981_v55 }
  0x4d   : > { %v684_v52 = vsel %vm585_vm1, %v1991_v60, 0.0  ;;  %vm864_vm2 = vcmp.eq.s32.totalorder %v1883_v21, %v2005_v4  ;;  %vm1141_vm3 = vcmp.eq.s32.totalorder %v1883_v21, %v2033_v23  ;;  %vm307_vm4 = vcmp.eq.s32.totalorder %v1887_v24, %v1969_v35 }
  0x4e   : > { %1390 = vmatpush1.msra.mxu0 %v1322_v44  ;;  %v1044_v54 = vadd.f32 %v964_v39, %v765_v15  ;;  %v764_v14 = vadd.f32 %v684_v52, %v407_v46  ;;  %v963_v53 = vsel %vm864_vm2, %v2018_v13, 0.0  ;;  %v1240_v59 = vsel %vm1141_vm3, %v2036_v1, 0.0 }
  0x4f   : > { %v406_v61 = vsel %vm307_vm4, %v1950_v27, 0.0  ;;  %vm584_vm5 = vcmp.eq.s32.totalorder %v1887_v24, %v1972_v47  ;;  %vm863_vm6 = vcmp.eq.s32.totalorder %v1887_v24, %v1996_v62  ;;  %vm1140_vm7 = vcmp.eq.s32.totalorder %v1887_v24, %v1999_v63 }
  0x50   : > { %v1321_v21 = vadd.f32 %v1241_v43, %v1044_v54  ;;  %v1043_v16 = vadd.f32 %v963_v53, %v764_v14  ;;  %v683_v0 = vsel %vm584_vm5, %v1953_v28, 0.0  ;;  %v962_v3 = vsel %vm863_vm6, %v1961_v38, 0.0 }
  0x51   : > { %v763_v5 = vadd.f32 %v683_v0, %v406_v61  ;;  %v1239_v6 = vsel %vm1140_vm7, %v1956_v31, 0.0  ;;  %vm306_vm8 = vcmp.eq.s32.totalorder %v1887_v24, %v1975_v51  ;;  %vm583_vm9 = vcmp.eq.s32.totalorder %v1887_v24, %v1981_v55 }
  0x52   : > { %1391 = vmatprep.subr.mxu0 %v1321_v21  ;;  %v1320_v17 = vadd.f32 %v1240_v59, %v1043_v16  ;;  %v405_v7 = vsel %vm306_vm8, %v1965_v45, 0.0  ;;  %v682_v10 = vsel %vm583_vm9, %v1991_v60, 0.0  ;;  %vm862_vm10 = vcmp.eq.s32.totalorder %v1887_v24, %v2005_v4 }
  0x53   : > { %v1042_v11 = vadd.f32 %v962_v3, %v763_v5  ;;  %v762_v12 = vadd.f32 %v682_v10, %v405_v7  ;;  %v961_v18 = vsel %vm862_vm10, %v2018_v13, 0.0  ;;  %vm1139_vm11 = vcmp.eq.s32.totalorder %v1887_v24, %v2033_v23 }
  0x54   : > { %1392 = vmatpush1.msra.mxu0 %v1320_v17  ;;  %v1238_v19 = vsel %vm1139_vm11, %v2036_v1, 0.0  ;;  %vm305_vm12 = vcmp.eq.s32.totalorder %v1890_v25, %v1969_v35  ;;  %vm582_vm13 = vcmp.eq.s32.totalorder %v1890_v25, %v1972_v47  ;;  %vm861_vm14 = vcmp.eq.s32.totalorder %v1890_v25, %v1996_v62 }
  0x55   : > { %v1319_v8 = vadd.f32 %v1239_v6, %v1042_v11  ;;  %v1041_v22 = vadd.f32 %v961_v18, %v762_v12  ;;  %v404_v29 = vsel %vm305_vm12, %v1950_v27, 0.0  ;;  %v681_v36 = vsel %vm582_vm13, %v1953_v28, 0.0 }
  0x56   : > { %v761_v37 = vadd.f32 %v681_v36, %v404_v29  ;;  %v960_v24 = vsel %vm861_vm14, %v1961_v38, 0.0  ;;  %vm1138_vm15 = vcmp.eq.s32.totalorder %v1890_v25, %v1999_v63  ;;  %vm304_vm0 = vcmp.eq.s32.totalorder %v1890_v25, %v1975_v51 }
  0x57   : > { %1393 = vmatprep.subr.mxu0 %v1319_v8  ;;  %v1318_v20 = vadd.f32 %v1238_v19, %v1041_v22  ;;  %v1237_v39 = vsel %vm1138_vm15, %v1956_v31, 0.0  ;;  %v403_v43 = vsel %vm304_vm0, %v1965_v45, 0.0  ;;  %vm581_vm1 = vcmp.eq.s32.totalorder %v1890_v25, %v1981_v55 }
  0x58   : > { %v1040_v44 = vadd.f32 %v960_v24, %v761_v37  ;;  %v680_v15 = vsel %vm581_vm1, %v1991_v60, 0.0  ;;  %vm860_vm2 = vcmp.eq.s32.totalorder %v1890_v25, %v2005_v4  ;;  %vm1137_vm3 = vcmp.eq.s32.totalorder %v1890_v25, %v2033_v23 }
  0x59   : > { %1394 = vmatpush1.msra.mxu0 %v1318_v20  ;;  %v760_v46 = vadd.f32 %v680_v15, %v403_v43  ;;  %v959_v52 = vsel %vm860_vm2, %v2018_v13, 0.0  ;;  %v1236_v54 = vsel %vm1137_vm3, %v2036_v1, 0.0  ;;  %vm303_vm4 = vcmp.eq.s32.totalorder %v1893_v26, %v1969_v35 }
  0x5a   : > { %v1317_v14 = vadd.f32 %v1237_v39, %v1040_v44  ;;  %v402_v53 = vsel %vm303_vm4, %v1950_v27, 0.0  ;;  %vm580_vm5 = vcmp.eq.s32.totalorder %v1893_v26, %v1972_v47  ;;  %vm859_vm6 = vcmp.eq.s32.totalorder %v1893_v26, %v1996_v62 }
  0x5b   : > { %v1039_v59 = vadd.f32 %v959_v52, %v760_v46  ;;  %v679_v25 = vsel %vm580_vm5, %v1953_v28, 0.0  ;;  %v958_v61 = vsel %vm859_vm6, %v1961_v38, 0.0  ;;  %vm1136_vm7 = vcmp.eq.s32.totalorder %v1893_v26, %v1999_v63 }
  0x5c   : > { %1395 = vmatprep.subr.mxu0 %v1317_v14  ;;  %v759_v21 = vadd.f32 %v679_v25, %v402_v53  ;;  %v1235_v16 = vsel %vm1136_vm7, %v1956_v31, 0.0  ;;  %vm302_vm8 = vcmp.eq.s32.totalorder %v1893_v26, %v1975_v51  ;;  %vm579_vm9 = vcmp.eq.s32.totalorder %v1893_v26, %v1981_v55 }
  0x5d   : > { %v1316_v0 = vadd.f32 %v1236_v54, %v1039_v59  ;;  %v401_v3 = vsel %vm302_vm8, %v1965_v45, 0.0  ;;  %v678_v5 = vsel %vm579_vm9, %v1991_v60, 0.0  ;;  %vm858_vm10 = vcmp.eq.s32.totalorder %v1893_v26, %v2005_v4 }
  0x5e   : > { %v1038_v6 = vadd.f32 %v958_v61, %v759_v21  ;;  %v758_v17 = vadd.f32 %v678_v5, %v401_v3  ;;  %v957_v7 = vsel %vm858_vm10, %v2018_v13, 0.0  ;;  %vm1135_vm11 = vcmp.eq.s32.totalorder %v1893_v26, %v2033_v23 }
  0x5f   : > { %1396 = vmatpush1.msra.mxu0 %v1316_v0  ;;  %v1234_v10 = vsel %vm1135_vm11, %v2036_v1, 0.0  ;;  %vm301_vm12 = vcmp.eq.s32.totalorder %v1897_v30, %v1969_v35  ;;  %vm578_vm13 = vcmp.eq.s32.totalorder %v1897_v30, %v1972_v47  ;;  %vm857_vm14 = vcmp.eq.s32.totalorder %v1897_v30, %v1996_v62 }
  0x60   : > { %v1315_v11 = vadd.f32 %v1235_v16, %v1038_v6  ;;  %v1037_v12 = vadd.f32 %v957_v7, %v758_v17  ;;  %v400_v18 = vsel %vm301_vm12, %v1950_v27, 0.0  ;;  %v677_v19 = vsel %vm578_vm13, %v1953_v28, 0.0 }
  0x61   : > { %v757_v8 = vadd.f32 %v677_v19, %v400_v18  ;;  %v956_v26 = vsel %vm857_vm14, %v1961_v38, 0.0  ;;  %vm1134_vm15 = vcmp.eq.s32.totalorder %v1897_v30, %v1999_v63  ;;  %vm300_vm0 = vcmp.eq.s32.totalorder %v1897_v30, %v1975_v51 }
  0x62   : > { %1397 = vmatprep.subr.mxu0 %v1315_v11  ;;  %v1314_v22 = vadd.f32 %v1234_v10, %v1037_v12  ;;  %v1233_v29 = vsel %vm1134_vm15, %v1956_v31, 0.0  ;;  %v399_v36 = vsel %vm300_vm0, %v1965_v45, 0.0  ;;  %vm577_vm1 = vcmp.eq.s32.totalorder %v1897_v30, %v1981_v55 }
  0x63   : > { %v1036_v37 = vadd.f32 %v956_v26, %v757_v8  ;;  %v676_v24 = vsel %vm577_vm1, %v1991_v60, 0.0  ;;  %vm856_vm2 = vcmp.eq.s32.totalorder %v1897_v30, %v2005_v4  ;;  %vm1133_vm3 = vcmp.eq.s32.totalorder %v1897_v30, %v2033_v23 }
  0x64   : > { %1398 = vmatpush1.msra.mxu0 %v1314_v22  ;;  %v756_v20 = vadd.f32 %v676_v24, %v399_v36  ;;  %v955_v39 = vsel %vm856_vm2, %v2018_v13, 0.0  ;;  %v1232_v43 = vsel %vm1133_vm3, %v2036_v1, 0.0  ;;  %vm299_vm4 = vcmp.eq.s32.totalorder %v1900_v32, %v1969_v35 }
  0x65   : > { %v1313_v44 = vadd.f32 %v1233_v29, %v1036_v37  ;;  %v398_v15 = vsel %vm299_vm4, %v1950_v27, 0.0  ;;  %vm576_vm5 = vcmp.eq.s32.totalorder %v1900_v32, %v1972_v47  ;;  %vm855_vm6 = vcmp.eq.s32.totalorder %v1900_v32, %v1996_v62 }
  0x66   : > { %v1035_v46 = vadd.f32 %v955_v39, %v756_v20  ;;  %v675_v30 = vsel %vm576_vm5, %v1953_v28, 0.0  ;;  %v954_v52 = vsel %vm855_vm6, %v1961_v38, 0.0  ;;  %vm1132_vm7 = vcmp.eq.s32.totalorder %v1900_v32, %v1999_v63 }
  0x67   : > { %1399 = vmatprep.subr.mxu0 %v1313_v44  ;;  %v755_v54 = vadd.f32 %v675_v30, %v398_v15  ;;  %v1231_v14 = vsel %vm1132_vm7, %v1956_v31, 0.0  ;;  %vm298_vm8 = vcmp.eq.s32.totalorder %v1900_v32, %v1975_v51  ;;  %vm575_vm9 = vcmp.eq.s32.totalorder %v1900_v32, %v1981_v55 }
  0x68   : > { %v1312_v53 = vadd.f32 %v1232_v43, %v1035_v46  ;;  %v397_v59 = vsel %vm298_vm8, %v1965_v45, 0.0  ;;  %v674_v25 = vsel %vm575_vm9, %v1991_v60, 0.0  ;;  %vm854_vm10 = vcmp.eq.s32.totalorder %v1900_v32, %v2005_v4 }
  0x69   : > { %v1034_v61 = vadd.f32 %v954_v52, %v755_v54  ;;  %v754_v21 = vadd.f32 %v674_v25, %v397_v59  ;;  %v953_v16 = vsel %vm854_vm10, %v2018_v13, 0.0  ;;  %vm1131_vm11 = vcmp.eq.s32.totalorder %v1900_v32, %v2033_v23 }
  0x6a   : > { %1400 = vmatpush1.msra.mxu0 %v1312_v53  ;;  %v1230_v0 = vsel %vm1131_vm11, %v2036_v1, 0.0  ;;  %vm297_vm12 = vcmp.eq.s32.totalorder %v1903_v33, %v1969_v35  ;;  %vm574_vm13 = vcmp.eq.s32.totalorder %v1903_v33, %v1972_v47  ;;  %vm853_vm14 = vcmp.eq.s32.totalorder %v1903_v33, %v1996_v62 }
  0x6b   : > { %v1311_v3 = vadd.f32 %v1231_v14, %v1034_v61  ;;  %v1033_v5 = vadd.f32 %v953_v16, %v754_v21  ;;  %v396_v6 = vsel %vm297_vm12, %v1950_v27, 0.0  ;;  %v673_v17 = vsel %vm574_vm13, %v1953_v28, 0.0 }
  0x6c   : > { %v753_v7 = vadd.f32 %v673_v17, %v396_v6  ;;  %v952_v32 = vsel %vm853_vm14, %v1961_v38, 0.0  ;;  %vm1130_vm15 = vcmp.eq.s32.totalorder %v1903_v33, %v1999_v63  ;;  %vm296_vm0 = vcmp.eq.s32.totalorder %v1903_v33, %v1975_v51 }
  0x6d   : > { %1401 = vmatprep.subr.mxu0 %v1311_v3  ;;  %v1310_v10 = vadd.f32 %v1230_v0, %v1033_v5  ;;  %v1229_v11 = vsel %vm1130_vm15, %v1956_v31, 0.0  ;;  %v395_v12 = vsel %vm296_vm0, %v1965_v45, 0.0  ;;  %vm573_vm1 = vcmp.eq.s32.totalorder %v1903_v33, %v1981_v55 }
  0x6e   : > { %v1032_v18 = vadd.f32 %v952_v32, %v753_v7  ;;  %v672_v19 = vsel %vm573_vm1, %v1991_v60, 0.0  ;;  %vm852_vm2 = vcmp.eq.s32.totalorder %v1903_v33, %v2005_v4  ;;  %vm1129_vm3 = vcmp.eq.s32.totalorder %v1903_v33, %v2033_v23 }
  0x6f   : > { %1402 = vmatpush1.msra.mxu0 %v1310_v10  ;;  %v752_v8 = vadd.f32 %v672_v19, %v395_v12  ;;  %v951_v26 = vsel %vm852_vm2, %v2018_v13, 0.0  ;;  %v1228_v22 = vsel %vm1129_vm3, %v2036_v1, 0.0  ;;  %vm295_vm4 = vcmp.eq.s32.totalorder %v1906_v34, %v1969_v35 }
  0x70   : > { %v1309_v29 = vadd.f32 %v1229_v11, %v1032_v18  ;;  %v394_v36 = vsel %vm295_vm4, %v1950_v27, 0.0  ;;  %vm572_vm5 = vcmp.eq.s32.totalorder %v1906_v34, %v1972_v47  ;;  %vm851_vm6 = vcmp.eq.s32.totalorder %v1906_v34, %v1996_v62 }
  0x71   : > { %v1031_v37 = vadd.f32 %v951_v26, %v752_v8  ;;  %v671_v33 = vsel %vm572_vm5, %v1953_v28, 0.0  ;;  %v950_v24 = vsel %vm851_vm6, %v1961_v38, 0.0  ;;  %vm1128_vm7 = vcmp.eq.s32.totalorder %v1906_v34, %v1999_v63 }
  0x72   : > { %1403 = vmatprep.subr.mxu0 %v1309_v29  ;;  %v751_v20 = vadd.f32 %v671_v33, %v394_v36  ;;  %v1227_v39 = vsel %vm1128_vm7, %v1956_v31, 0.0  ;;  %vm294_vm8 = vcmp.eq.s32.totalorder %v1906_v34, %v1975_v51  ;;  %vm571_vm9 = vcmp.eq.s32.totalorder %v1906_v34, %v1981_v55 }
  0x73   : > { %v1308_v43 = vadd.f32 %v1228_v22, %v1031_v37  ;;  %v393_v44 = vsel %vm294_vm8, %v1965_v45, 0.0  ;;  %v670_v15 = vsel %vm571_vm9, %v1991_v60, 0.0  ;;  %vm850_vm10 = vcmp.eq.s32.totalorder %v1906_v34, %v2005_v4 }
  0x74   : > { %v1030_v46 = vadd.f32 %v950_v24, %v751_v20  ;;  %v750_v30 = vadd.f32 %v670_v15, %v393_v44  ;;  %v949_v52 = vsel %vm850_vm10, %v2018_v13, 0.0  ;;  %vm1127_vm11 = vcmp.eq.s32.totalorder %v1906_v34, %v2033_v23 }
  0x75   : > { %1404 = vmatpush1.msra.mxu0 %v1308_v43  ;;  %v1226_v54 = vsel %vm1127_vm11, %v2036_v1, 0.0  ;;  %vm293_vm12 = vcmp.eq.s32.totalorder %v1912_v40, %v1969_v35  ;;  %vm570_vm13 = vcmp.eq.s32.totalorder %v1912_v40, %v1972_v47  ;;  %vm849_vm14 = vcmp.eq.s32.totalorder %v1912_v40, %v1996_v62 }
  0x76   : > { %v1307_v14 = vadd.f32 %v1227_v39, %v1030_v46  ;;  %v1029_v53 = vadd.f32 %v949_v52, %v750_v30  ;;  %v392_v59 = vsel %vm293_vm12, %v1950_v27, 0.0  ;;  %v669_v25 = vsel %vm570_vm13, %v1953_v28, 0.0 }
  0x77   : > { %v749_v61 = vadd.f32 %v669_v25, %v392_v59  ;;  %v948_v34 = vsel %vm849_vm14, %v1961_v38, 0.0  ;;  %vm1126_vm15 = vcmp.eq.s32.totalorder %v1912_v40, %v1999_v63  ;;  %vm292_vm0 = vcmp.eq.s32.totalorder %v1912_v40, %v1975_v51 }
  0x78   : > { %1405 = vmatprep.subr.mxu0 %v1307_v14  ;;  %v1306_v21 = vadd.f32 %v1226_v54, %v1029_v53  ;;  %v1225_v16 = vsel %vm1126_vm15, %v1956_v31, 0.0  ;;  %v391_v0 = vsel %vm292_vm0, %v1965_v45, 0.0  ;;  %vm569_vm1 = vcmp.eq.s32.totalorder %v1912_v40, %v1981_v55 }
  0x79   : > { %v1028_v3 = vadd.f32 %v948_v34, %v749_v61  ;;  %v668_v5 = vsel %vm569_vm1, %v1991_v60, 0.0  ;;  %vm848_vm2 = vcmp.eq.s32.totalorder %v1912_v40, %v2005_v4  ;;  %vm1125_vm3 = vcmp.eq.s32.totalorder %v1912_v40, %v2033_v23 }
  0x7a   : > { %1406 = vmatpush1.msra.mxu0 %v1306_v21  ;;  %v748_v6 = vadd.f32 %v668_v5, %v391_v0  ;;  %v947_v17 = vsel %vm848_vm2, %v2018_v13, 0.0  ;;  %v1224_v7 = vsel %vm1125_vm3, %v2036_v1, 0.0  ;;  %vm291_vm4 = vcmp.eq.s32.totalorder %v1915_v41, %v1969_v35 }
  0x7b   : > { %v1305_v32 = vadd.f32 %v1225_v16, %v1028_v3  ;;  %v390_v10 = vsel %vm291_vm4, %v1950_v27, 0.0  ;;  %vm568_vm5 = vcmp.eq.s32.totalorder %v1915_v41, %v1972_v47  ;;  %vm847_vm6 = vcmp.eq.s32.totalorder %v1915_v41, %v1996_v62 }
  0x7c   : > { %v1027_v11 = vadd.f32 %v947_v17, %v748_v6  ;;  %v667_v40 = vsel %vm568_vm5, %v1953_v28, 0.0  ;;  %v946_v12 = vsel %vm847_vm6, %v1961_v38, 0.0  ;;  %vm1124_vm7 = vcmp.eq.s32.totalorder %v1915_v41, %v1999_v63 }
  0x7d   : > { %1407 = vmatprep.subr.mxu0 %v1305_v32  ;;  %v747_v18 = vadd.f32 %v667_v40, %v390_v10  ;;  %v1223_v19 = vsel %vm1124_vm7, %v1956_v31, 0.0  ;;  %vm290_vm8 = vcmp.eq.s32.totalorder %v1915_v41, %v1975_v51  ;;  %vm567_vm9 = vcmp.eq.s32.totalorder %v1915_v41, %v1981_v55 }
  0x7e   : > { %v1304_v8 = vadd.f32 %v1224_v7, %v1027_v11  ;;  %v389_v26 = vsel %vm290_vm8, %v1965_v45, 0.0  ;;  %v666_v22 = vsel %vm567_vm9, %v1991_v60, 0.0  ;;  %vm846_vm10 = vcmp.eq.s32.totalorder %v1915_v41, %v2005_v4 }
  0x7f   : > { %v1026_v29 = vadd.f32 %v946_v12, %v747_v18  ;;  %v746_v36 = vadd.f32 %v666_v22, %v389_v26  ;;  %v945_v37 = vsel %vm846_vm10, %v2018_v13, 0.0  ;;  %vm1123_vm11 = vcmp.eq.s32.totalorder %v1915_v41, %v2033_v23 }
  0x80   : > { %1408 = vmatpush1.msra.mxu0 %v1304_v8  ;;  %v1222_v33 = vsel %vm1123_vm11, %v2036_v1, 0.0  ;;  %vm289_vm12 = vcmp.eq.s32.totalorder %v1918_v42, %v1969_v35  ;;  %vm566_vm13 = vcmp.eq.s32.totalorder %v1918_v42, %v1972_v47  ;;  %vm845_vm14 = vcmp.eq.s32.totalorder %v1918_v42, %v1996_v62 }
  0x81   : > { %v1303_v24 = vadd.f32 %v1223_v19, %v1026_v29  ;;  %v1025_v20 = vadd.f32 %v945_v37, %v746_v36  ;;  %v388_v39 = vsel %vm289_vm12, %v1950_v27, 0.0  ;;  %v665_v43 = vsel %vm566_vm13, %v1953_v28, 0.0 }
  0x82   : > { %v745_v44 = vadd.f32 %v665_v43, %v388_v39  ;;  %v944_v41 = vsel %vm845_vm14, %v1961_v38, 0.0  ;;  %vm1122_vm15 = vcmp.eq.s32.totalorder %v1918_v42, %v1999_v63  ;;  %vm288_vm0 = vcmp.eq.s32.totalorder %v1918_v42, %v1975_v51 }
  0x83   : > { %1409 = vmatprep.subr.mxu0 %v1303_v24  ;;  %v1302_v15 = vadd.f32 %v1222_v33, %v1025_v20  ;;  %v1221_v46 = vsel %vm1122_vm15, %v1956_v31, 0.0  ;;  %v387_v30 = vsel %vm288_vm0, %v1965_v45, 0.0  ;;  %vm565_vm1 = vcmp.eq.s32.totalorder %v1918_v42, %v1981_v55 }
  0x84   : > { %v1024_v52 = vadd.f32 %v944_v41, %v745_v44  ;;  %v664_v54 = vsel %vm565_vm1, %v1991_v60, 0.0  ;;  %vm844_vm2 = vcmp.eq.s32.totalorder %v1918_v42, %v2005_v4  ;;  %vm1121_vm3 = vcmp.eq.s32.totalorder %v1918_v42, %v2033_v23 }
  0x85   : > { %1410 = vmatpush1.msra.mxu0 %v1302_v15  ;;  %v744_v14 = vadd.f32 %v664_v54, %v387_v30  ;;  %v943_v53 = vsel %vm844_vm2, %v2018_v13, 0.0  ;;  %v1220_v59 = vsel %vm1121_vm3, %v2036_v1, 0.0  ;;  %vm287_vm4 = vcmp.eq.s32.totalorder %v1921_v48, %v1969_v35 }
  0x86   : > { %v1301_v25 = vadd.f32 %v1221_v46, %v1024_v52  ;;  %v386_v61 = vsel %vm287_vm4, %v1950_v27, 0.0  ;;  %vm564_vm5 = vcmp.eq.s32.totalorder %v1921_v48, %v1972_v47  ;;  %vm843_vm6 = vcmp.eq.s32.totalorder %v1921_v48, %v1996_v62 }
  0x87   : > { %v1023_v34 = vadd.f32 %v943_v53, %v744_v14  ;;  %v663_v42 = vsel %vm564_vm5, %v1953_v28, 0.0  ;;  %v942_v21 = vsel %vm843_vm6, %v1961_v38, 0.0  ;;  %vm1120_vm7 = vcmp.eq.s32.totalorder %v1921_v48, %v1999_v63 }
  0x88   : > { %1411 = vmatprep.subr.mxu0 %v1301_v25  ;;  %v743_v16 = vadd.f32 %v663_v42, %v386_v61  ;;  %v1219_v0 = vsel %vm1120_vm7, %v1956_v31, 0.0  ;;  %vm286_vm8 = vcmp.eq.s32.totalorder %v1921_v48, %v1975_v51  ;;  %vm563_vm9 = vcmp.eq.s32.totalorder %v1921_v48, %v1981_v55 }
  0x89   : > { %v1300_v3 = vadd.f32 %v1220_v59, %v1023_v34  ;;  %v385_v5 = vsel %vm286_vm8, %v1965_v45, 0.0  ;;  %v662_v6 = vsel %vm563_vm9, %v1991_v60, 0.0  ;;  %vm842_vm10 = vcmp.eq.s32.totalorder %v1921_v48, %v2005_v4 }
  0x8a   : > { %v1022_v17 = vadd.f32 %v942_v21, %v743_v16  ;;  %v742_v7 = vadd.f32 %v662_v6, %v385_v5  ;;  %v941_v32 = vsel %vm842_vm10, %v2018_v13, 0.0  ;;  %vm1119_vm11 = vcmp.eq.s32.totalorder %v1921_v48, %v2033_v23 }
  0x8b   : > { %1412 = vmatpush1.msra.mxu0 %v1300_v3  ;;  %v1218_v10 = vsel %vm1119_vm11, %v2036_v1, 0.0  ;;  %vm285_vm12 = vcmp.eq.s32.totalorder %v1865_v9, %v1969_v35  ;;  %vm562_vm13 = vcmp.eq.s32.totalorder %v1865_v9, %v1972_v47  ;;  %vm841_vm14 = vcmp.eq.s32.totalorder %v1865_v9, %v1996_v62 }
  0x8c   : > { %v1299_v11 = vadd.f32 %v1219_v0, %v1022_v17  ;;  %v1021_v40 = vadd.f32 %v941_v32, %v742_v7  ;;  %v384_v12 = vsel %vm285_vm12, %v1950_v27, 0.0  ;;  %v661_v18 = vsel %vm562_vm13, %v1953_v28, 0.0 }
  0x8d   : > { %v741_v19 = vadd.f32 %v661_v18, %v384_v12  ;;  %v940_v48 = vsel %vm841_vm14, %v1961_v38, 0.0  ;;  %vm1118_vm15 = vcmp.eq.s32.totalorder %v1865_v9, %v1999_v63  ;;  %vm284_vm0 = vcmp.eq.s32.totalorder %v1865_v9, %v1975_v51 }
  0x8e   : > { %1413 = vmatprep.subr.mxu0 %v1299_v11  ;;  %v1298_v8 = vadd.f32 %v1218_v10, %v1021_v40  ;;  %v1217_v26 = vsel %vm1118_vm15, %v1956_v31, 0.0  ;;  %v383_v22 = vsel %vm284_vm0, %v1965_v45, 0.0  ;;  %vm561_vm1 = vcmp.eq.s32.totalorder %v1865_v9, %v1981_v55 }
  0x8f   : > { %v1020_v29 = vadd.f32 %v940_v48, %v741_v19  ;;  %v660_v36 = vsel %vm561_vm1, %v1991_v60, 0.0  ;;  %vm840_vm2 = vcmp.eq.s32.totalorder %v1865_v9, %v2005_v4  ;;  %vm1117_vm3 = vcmp.eq.s32.totalorder %v1865_v9, %v2033_v23 }
  0x90   : > { %1414 = vmatpush1.msra.mxu0 %v1298_v8  ;;  %v740_v37 = vadd.f32 %v660_v36, %v383_v22  ;;  %v939_v33 = vsel %vm840_vm2, %v2018_v13, 0.0  ;;  %v1216_v24 = vsel %vm1117_vm3, %v2036_v1, 0.0  ;;  %vm347_vm4 = vcmp.eq.s32.totalorder %v1924_v49, %v1969_v35 }
  0x91   : > { %v1297_v20 = vadd.f32 %v1217_v26, %v1020_v29  ;;  %v446_v39 = vsel %vm347_vm4, %v1950_v27, 0.0  ;;  %vm624_vm5 = vcmp.eq.s32.totalorder %v1924_v49, %v1972_v47  ;;  %vm903_vm6 = vcmp.eq.s32.totalorder %v1924_v49, %v1996_v62 }
  0x92   : > { %v1019_v43 = vadd.f32 %v939_v33, %v740_v37  ;;  %v723_v44 = vsel %vm624_vm5, %v1953_v28, 0.0  ;;  %v1002_v41 = vsel %vm903_vm6, %v1961_v38, 0.0  ;;  %vm1180_vm7 = vcmp.eq.s32.totalorder %v1924_v49, %v1999_v63 }
  0x93   : > { %1415 = vmatprep.subr.mxu0 %v1297_v20  ;;  %v803_v15 = vadd.f32 %v723_v44, %v446_v39  ;;  %v1279_v46 = vsel %vm1180_vm7, %v1956_v31, 0.0  ;;  %vm346_vm8 = vcmp.eq.s32.totalorder %v1924_v49, %v1975_v51  ;;  %vm623_vm9 = vcmp.eq.s32.totalorder %v1924_v49, %v1981_v55 }
  0x94   : > { %v1296_v30 = vadd.f32 %v1216_v24, %v1019_v43  ;;  %v445_v52 = vsel %vm346_vm8, %v1965_v45, 0.0  ;;  %v722_v54 = vsel %vm623_vm9, %v1991_v60, 0.0  ;;  %vm902_vm10 = vcmp.eq.s32.totalorder %v1924_v49, %v2005_v4 }
  0x95   : > { %v1082_v14 = vadd.f32 %v1002_v41, %v803_v15  ;;  %v802_v53 = vadd.f32 %v722_v54, %v445_v52  ;;  %v1001_v59 = vsel %vm902_vm10, %v2018_v13, 0.0  ;;  %vm1179_vm11 = vcmp.eq.s32.totalorder %v1924_v49, %v2033_v23 }
  0x96   : > { %1416 = vmatpush1.msra.mxu0 %v1296_v30  ;;  %v1278_v25 = vsel %vm1179_vm11, %v2036_v1, 0.0  ;;  %vm345_vm12 = vcmp.eq.s32.totalorder %v1927_v50, %v1969_v35  ;;  %vm622_vm13 = vcmp.eq.s32.totalorder %v1927_v50, %v1972_v47  ;;  %vm901_vm14 = vcmp.eq.s32.totalorder %v1927_v50, %v1996_v62 }
  0x97   : > { %v1359_v61 = vadd.f32 %v1279_v46, %v1082_v14  ;;  %v1081_v34 = vadd.f32 %v1001_v59, %v802_v53  ;;  %v444_v42 = vsel %vm345_vm12, %v1950_v27, 0.0  ;;  %v721_v21 = vsel %vm622_vm13, %v1953_v28, 0.0 }
  0x98   : > { %v801_v16 = vadd.f32 %v721_v21, %v444_v42  ;;  %v1000_v49 = vsel %vm901_vm14, %v1961_v38, 0.0  ;;  %vm1178_vm15 = vcmp.eq.s32.totalorder %v1927_v50, %v1999_v63  ;;  %vm344_vm0 = vcmp.eq.s32.totalorder %v1927_v50, %v1975_v51 }
  0x99   : > { %1417 = vmatprep.subr.mxu0 %v1359_v61  ;;  %v1358_v0 = vadd.f32 %v1278_v25, %v1081_v34  ;;  %v1277_v3 = vsel %vm1178_vm15, %v1956_v31, 0.0  ;;  %v443_v5 = vsel %vm344_vm0, %v1965_v45, 0.0  ;;  %vm621_vm1 = vcmp.eq.s32.totalorder %v1927_v50, %v1981_v55 }
  0x9a   : > { %v1080_v6 = vadd.f32 %v1000_v49, %v801_v16  ;;  %v720_v17 = vsel %vm621_vm1, %v1991_v60, 0.0  ;;  %vm900_vm2 = vcmp.eq.s32.totalorder %v1927_v50, %v2005_v4  ;;  %vm1177_vm3 = vcmp.eq.s32.totalorder %v1927_v50, %v2033_v23 }
  0x9b   : > { %1418 = vmatpush2.msra.mxu0 %v1358_v0  ;;  %v800_v7 = vadd.f32 %v720_v17, %v443_v5  ;;  %v999_v32 = vsel %vm900_vm2, %v2018_v13, 0.0  ;;  %v1276_v10 = vsel %vm1177_vm3, %v2036_v1, 0.0  ;;  %vm343_vm4 = vcmp.eq.s32.totalorder %v1930_v56, %v1969_v35 }
  0x9c   : > { %v1357_v11 = vadd.f32 %v1277_v3, %v1080_v6  ;;  %v442_v40 = vsel %vm343_vm4, %v1950_v27, 0.0  ;;  %vm620_vm5 = vcmp.eq.s32.totalorder %v1930_v56, %v1972_v47  ;;  %vm899_vm6 = vcmp.eq.s32.totalorder %v1930_v56, %v1996_v62 }
  0x9d   : > { %v1079_v12 = vadd.f32 %v999_v32, %v800_v7  ;;  %v719_v50 = vsel %vm620_vm5, %v1953_v28, 0.0  ;;  %v998_v18 = vsel %vm899_vm6, %v1961_v38, 0.0  ;;  %vm1176_vm7 = vcmp.eq.s32.totalorder %v1930_v56, %v1999_v63 }
  0x9e   : > { %1419 = vmatprep.subr.mxu0 %v1357_v11  ;;  %v799_v19 = vadd.f32 %v719_v50, %v442_v40  ;;  %v1275_v48 = vsel %vm1176_vm7, %v1956_v31, 0.0  ;;  %vm342_vm8 = vcmp.eq.s32.totalorder %v1930_v56, %v1975_v51  ;;  %vm619_vm9 = vcmp.eq.s32.totalorder %v1930_v56, %v1981_v55 }
  0x9f   : > { %v1356_v8 = vadd.f32 %v1276_v10, %v1079_v12  ;;  %v441_v26 = vsel %vm342_vm8, %v1965_v45, 0.0  ;;  %v718_v22 = vsel %vm619_vm9, %v1991_v60, 0.0  ;;  %vm898_vm10 = vcmp.eq.s32.totalorder %v1930_v56, %v2005_v4 }
  0xa0   : > { %v1078_v29 = vadd.f32 %v998_v18, %v799_v19  ;;  %v798_v36 = vadd.f32 %v718_v22, %v441_v26  ;;  %v997_v37 = vsel %vm898_vm10, %v2018_v13, 0.0  ;;  %vm1175_vm11 = vcmp.eq.s32.totalorder %v1930_v56, %v2033_v23 }
  0xa1   : > { %1420 = vmatpush2.msra.mxu0 %v1356_v8  ;;  %v1274_v33 = vsel %vm1175_vm11, %v2036_v1, 0.0  ;;  %vm341_vm12 = vcmp.eq.s32.totalorder %v1933_v57, %v1969_v35  ;;  %vm618_vm13 = vcmp.eq.s32.totalorder %v1933_v57, %v1972_v47  ;;  %vm897_vm14 = vcmp.eq.s32.totalorder %v1933_v57, %v1996_v62 }
  0xa2   : > { %v1355_v24 = vadd.f32 %v1275_v48, %v1078_v29  ;;  %v1077_v20 = vadd.f32 %v997_v37, %v798_v36  ;;  %v440_v39 = vsel %vm341_vm12, %v1950_v27, 0.0  ;;  %v717_v43 = vsel %vm618_vm13, %v1953_v28, 0.0 }
  0xa3   : > { %v797_v44 = vadd.f32 %v717_v43, %v440_v39  ;;  %v996_v56 = vsel %vm897_vm14, %v1961_v38, 0.0  ;;  %vm1174_vm15 = vcmp.eq.s32.totalorder %v1933_v57, %v1999_v63  ;;  %vm340_vm0 = vcmp.eq.s32.totalorder %v1933_v57, %v1975_v51 }
  0xa4   : > { %1421 = vmatprep.subr.mxu0 %v1355_v24  ;;  %v1354_v41 = vadd.f32 %v1274_v33, %v1077_v20  ;;  %v1273_v15 = vsel %vm1174_vm15, %v1956_v31, 0.0  ;;  %v439_v46 = vsel %vm340_vm0, %v1965_v45, 0.0  ;;  %vm617_vm1 = vcmp.eq.s32.totalorder %v1933_v57, %v1981_v55 }
  0xa5   : > { %v1076_v30 = vadd.f32 %v996_v56, %v797_v44  ;;  %v716_v52 = vsel %vm617_vm1, %v1991_v60, 0.0  ;;  %vm896_vm2 = vcmp.eq.s32.totalorder %v1933_v57, %v2005_v4  ;;  %vm1173_vm3 = vcmp.eq.s32.totalorder %v1933_v57, %v2033_v23 }
  0xa6   : > { %1422 = vmatpush2.msra.mxu0 %v1354_v41  ;;  %v796_v54 = vadd.f32 %v716_v52, %v439_v46  ;;  %v995_v14 = vsel %vm896_vm2, %v2018_v13, 0.0  ;;  %v1272_v53 = vsel %vm1173_vm3, %v2036_v1, 0.0  ;;  %vm339_vm4 = vcmp.eq.s32.totalorder %v1936_v58, %v1969_v35 }
  0xa7   : > { %v1353_v59 = vadd.f32 %v1273_v15, %v1076_v30  ;;  %v438_v25 = vsel %vm339_vm4, %v1950_v27, 0.0  ;;  %vm616_vm5 = vcmp.eq.s32.totalorder %v1936_v58, %v1972_v47  ;;  %vm895_vm6 = vcmp.eq.s32.totalorder %v1936_v58, %v1996_v62 }
  0xa8   : > { %v1075_v61 = vadd.f32 %v995_v14, %v796_v54  ;;  %v715_v57 = vsel %vm616_vm5, %v1953_v28, 0.0  ;;  %v994_v34 = vsel %vm895_vm6, %v1961_v38, 0.0  ;;  %vm1172_vm7 = vcmp.eq.s32.totalorder %v1936_v58, %v1999_v63 }
  0xa9   : > { %1423 = vmatprep.subr.mxu0 %v1353_v59  ;;  %v795_v42 = vadd.f32 %v715_v57, %v438_v25  ;;  %v1271_v21 = vsel %vm1172_vm7, %v1956_v31, 0.0  ;;  %vm338_vm8 = vcmp.eq.s32.totalorder %v1936_v58, %v1975_v51  ;;  %vm615_vm9 = vcmp.eq.s32.totalorder %v1936_v58, %v1981_v55 }
  0xaa   : > { %v1352_v16 = vadd.f32 %v1272_v53, %v1075_v61  ;;  %v437_v49 = vsel %vm338_vm8, %v1965_v45, 0.0  ;;  %v714_v0 = vsel %vm615_vm9, %v1991_v60, 0.0  ;;  %vm894_vm10 = vcmp.eq.s32.totalorder %v1936_v58, %v2005_v4 }
  0xab   : > { %v1074_v3 = vadd.f32 %v994_v34, %v795_v42  ;;  %v794_v5 = vadd.f32 %v714_v0, %v437_v49  ;;  %v993_v6 = vsel %vm894_vm10, %v2018_v13, 0.0  ;;  %vm1171_vm11 = vcmp.eq.s32.totalorder %v1936_v58, %v2033_v23 }
  0xac   : > { %1424 = vmatpush2.msra.mxu0 %v1352_v16  ;;  %v1270_v17 = vsel %vm1171_vm11, %v2036_v1, 0.0  ;;  %vm337_vm12 = vcmp.eq.s32.totalorder %v1941_v2, %v1969_v35  ;;  %vm614_vm13 = vcmp.eq.s32.totalorder %v1941_v2, %v1972_v47  ;;  %vm893_vm14 = vcmp.eq.s32.totalorder %v1941_v2, %v1996_v62 }
  0xad   : > { %v1351_v7 = vadd.f32 %v1271_v21, %v1074_v3  ;;  %v1073_v32 = vadd.f32 %v993_v6, %v794_v5  ;;  %v436_v10 = vsel %vm337_vm12, %v1950_v27, 0.0  ;;  %v713_v11 = vsel %vm614_vm13, %v1953_v28, 0.0 }
  0xae   : > { %v793_v40 = vadd.f32 %v713_v11, %v436_v10  ;;  %v992_v58 = vsel %vm893_vm14, %v1961_v38, 0.0  ;;  %vm1170_vm15 = vcmp.eq.s32.totalorder %v1941_v2, %v1999_v63  ;;  %vm336_vm0 = vcmp.eq.s32.totalorder %v1941_v2, %v1975_v51 }
  0xaf   : > { %1425 = vmatprep.subr.mxu0 %v1351_v7  ;;  %v1350_v12 = vadd.f32 %v1270_v17, %v1073_v32  ;;  %v1269_v50 = vsel %vm1170_vm15, %v1956_v31, 0.0  ;;  %v435_v18 = vsel %vm336_vm0, %v1965_v45, 0.0  ;;  %vm613_vm1 = vcmp.eq.s32.totalorder %v1941_v2, %v1981_v55 }
  0xb0   : > { %v1072_v19 = vadd.f32 %v992_v58, %v793_v40  ;;  %v712_v48 = vsel %vm613_vm1, %v1991_v60, 0.0  ;;  %vm892_vm2 = vcmp.eq.s32.totalorder %v1941_v2, %v2005_v4  ;;  %vm1169_vm3 = vcmp.eq.s32.totalorder %v1941_v2, %v2033_v23 }
  0xb1   : > { %1426 = vmatpush2.msra.mxu0 %v1350_v12  ;;  %v792_v8 = vadd.f32 %v712_v48, %v435_v18  ;;  %v991_v26 = vsel %vm892_vm2, %v2018_v13, 0.0  ;;  %v1268_v22 = vsel %vm1169_vm3, %v2036_v1, 0.0  ;;  %v245_v29 = vadd.s32 200, %v1865_v9 }
  0xb2   : > { %v1349_v36 = vadd.f32 %v1269_v50, %v1072_v19  ;;  %v244_v37 = vadd.s32 192, %v1865_v9  ;;  %v2540_v33 = vadd.s32 312, %v1865_v9  ;;  %v2543_v24 = vadd.s32 184, %v1865_v9 }
  0xb3   : > { %v1071_v20 = vadd.f32 %v991_v26, %v792_v8  ;;  %vm335_vm4 = vcmp.eq.s32.totalorder %v245_v29, %v1969_v35  ;;  %vm612_vm5 = vcmp.eq.s32.totalorder %v245_v29, %v1972_v47  ;;  %vm891_vm6 = vcmp.eq.s32.totalorder %v245_v29, %v1996_v62 }
  0xb4   : > { %1427 = vmatprep.subr.mxu0 %v1349_v36  ;;  %v434_v2 = vsel %vm335_vm4, %v1950_v27, 0.0  ;;  %v711_v39 = vsel %vm612_vm5, %v1953_v28, 0.0  ;;  %v990_v43 = vsel %vm891_vm6, %v1961_v38, 0.0  ;;  %vm1168_vm7 = vcmp.eq.s32.totalorder %v245_v29, %v1999_v63 }
  0xb5   : > { %v1348_v44 = vadd.f32 %v1268_v22, %v1071_v20  ;;  %v791_v56 = vadd.f32 %v711_v39, %v434_v2  ;;  %v1267_v41 = vsel %vm1168_vm7, %v1956_v31, 0.0  ;;  %vm334_vm8 = vcmp.eq.s32.totalorder %v245_v29, %v1975_v51 }
  0xb6   : > { %v433_v15 = vsel %vm334_vm8, %v1965_v45, 0.0  ;;  %vm611_vm9 = vcmp.eq.s32.totalorder %v245_v29, %v1981_v55  ;;  %vm890_vm10 = vcmp.eq.s32.totalorder %v245_v29, %v2005_v4  ;;  %vm1167_vm11 = vcmp.eq.s32.totalorder %v245_v29, %v2033_v23 }
  0xb7   : > { %1428 = vmatpush2.msra.mxu0 %v1348_v44  ;;  %v1070_v46 = vadd.f32 %v990_v43, %v791_v56  ;;  %v710_v30 = vsel %vm611_vm9, %v1991_v60, 0.0  ;;  %v989_v52 = vsel %vm890_vm10, %v2018_v13, 0.0  ;;  %v1266_v54 = vsel %vm1167_vm11, %v2036_v1, 0.0 }
  0xb8   : > { %v790_v14 = vadd.f32 %v710_v30, %v433_v15  ;;  %vm333_vm12 = vcmp.eq.s32.totalorder %v244_v37, %v1969_v35  ;;  %vm610_vm13 = vcmp.eq.s32.totalorder %v244_v37, %v1972_v47  ;;  %vm889_vm14 = vcmp.eq.s32.totalorder %v244_v37, %v1996_v62 }
  0xb9   : > { %v1347_v53 = vadd.f32 %v1267_v41, %v1070_v46  ;;  %v432_v59 = vsel %vm333_vm12, %v1950_v27, 0.0  ;;  %v709_v25 = vsel %vm610_vm13, %v1953_v28, 0.0  ;;  %v988_v61 = vsel %vm889_vm14, %v1961_v38, 0.0 }
  0xba   : > { %v1069_v57 = vadd.f32 %v989_v52, %v790_v14  ;;  %v789_v34 = vadd.f32 %v709_v25, %v432_v59  ;;  %vm1166_vm15 = vcmp.eq.s32.totalorder %v244_v37, %v1999_v63  ;;  %vm363_vm0 = vcmp.eq.s32.totalorder %v2540_v33, %v1969_v35 }
  0xbb   : > { %1429 = vmatprep.subr.mxu0 %v1347_v53  ;;  %v1265_v42 = vsel %vm1166_vm15, %v1956_v31, 0.0  ;;  %v462_v21 = vsel %vm363_vm0, %v1950_v27, 0.0  ;;  %vm640_vm1 = vcmp.eq.s32.totalorder %v2540_v33, %v1972_v47  ;;  %vm919_vm2 = vcmp.eq.s32.totalorder %v2540_v33, %v1996_v62 }
  0xbc   : > { %v1346_v16 = vadd.f32 %v1266_v54, %v1069_v57  ;;  %v1068_v49 = vadd.f32 %v988_v61, %v789_v34  ;;  %v739_v0 = vsel %vm640_vm1, %v1953_v28, 0.0  ;;  %v1018_v3 = vsel %vm919_vm2, %v1961_v38, 0.0 }
  0xbd   : > { %v819_v5 = vadd.f32 %v739_v0, %v462_v21  ;;  %vm1196_vm3 = vcmp.eq.s32.totalorder %v2540_v33, %v1999_v63  ;;  %vm332_vm4 = vcmp.eq.s32.totalorder %v244_v37, %v1975_v51  ;;  %vm609_vm5 = vcmp.eq.s32.totalorder %v244_v37, %v1981_v55 }
  0xbe   : > { %1430 = vmatpush2.msra.mxu0 %v1346_v16  ;;  %v1345_v6 = vadd.f32 %v1265_v42, %v1068_v49  ;;  %v1295_v17 = vsel %vm1196_vm3, %v1956_v31, 0.0  ;;  %v431_v7 = vsel %vm332_vm4, %v1965_v45, 0.0  ;;  %v708_v32 = vsel %vm609_vm5, %v1991_v60, 0.0 }
  0xbf   : > { %v1098_v10 = vadd.f32 %v1018_v3, %v819_v5  ;;  %v788_v11 = vadd.f32 %v708_v32, %v431_v7  ;;  %vm888_vm6 = vcmp.eq.s32.totalorder %v244_v37, %v2005_v4  ;;  %vm1165_vm7 = vcmp.eq.s32.totalorder %v244_v37, %v2033_v23 }
  0xc0   : > { %1431 = vmatprep.subr.mxu0 %v1345_v6  ;;  %v987_v40 = vsel %vm888_vm6, %v2018_v13, 0.0  ;;  %v1264_v58 = vsel %vm1165_vm7, %v2036_v1, 0.0  ;;  %vm362_vm8 = vcmp.eq.s32.totalorder %v2540_v33, %v1975_v51  ;;  %vm639_vm9 = vcmp.eq.s32.totalorder %v2540_v33, %v1981_v55 }
  0xc1   : > { %v1375_v12 = vadd.f32 %v1295_v17, %v1098_v10  ;;  %v1067_v50 = vadd.f32 %v987_v40, %v788_v11  ;;  %v461_v18 = vsel %vm362_vm8, %v1965_v45, 0.0  ;;  %v738_v19 = vsel %vm639_vm9, %v1991_v60, 0.0 }
  0xc2   : > { %v818_v48 = vadd.f32 %v738_v19, %v461_v18  ;;  %vm918_vm10 = vcmp.eq.s32.totalorder %v2540_v33, %v2005_v4  ;;  %vm1195_vm11 = vcmp.eq.s32.totalorder %v2540_v33, %v2033_v23  ;;  %vm331_vm12 = vcmp.eq.s32.totalorder %v2543_v24, %v1969_v35 }
  0xc3   : > { %1472 = vmatprep.subr.mxu1 %v1375_v12  ;;  %v1344_v8 = vadd.f32 %v1264_v58, %v1067_v50  ;;  %v1017_v26 = vsel %vm918_vm10, %v2018_v13, 0.0  ;;  %v1294_v22 = vsel %vm1195_vm11, %v2036_v1, 0.0  ;;  %v430_v29 = vsel %vm331_vm12, %v1950_v27, 0.0 }
  0xc4   : > { %v1097_v36 = vadd.f32 %v1017_v26, %v818_v48  ;;  %vm608_vm13 = vcmp.eq.s32.totalorder %v2543_v24, %v1972_v47  ;;  %vm887_vm14 = vcmp.eq.s32.totalorder %v2543_v24, %v1996_v62  ;;  %vm1164_vm15 = vcmp.eq.s32.totalorder %v2543_v24, %v1999_v63 }
  0xc5   : > { %1432 = vmatpush2.msra.mxu0 %v1344_v8  ;;  %v707_v37 = vsel %vm608_vm13, %v1953_v28, 0.0  ;;  %v986_v33 = vsel %vm887_vm14, %v1961_v38, 0.0  ;;  %v1263_v20 = vsel %vm1164_vm15, %v1956_v31, 0.0  ;;  %v258_v2 = vadd.s32 304, %v1865_v9 }
  0xc6   : > { %v1374_v39 = vadd.f32 %v1294_v22, %v1097_v36  ;;  %v787_v43 = vadd.f32 %v707_v37, %v430_v29  ;;  %vm330_vm0 = vcmp.eq.s32.totalorder %v2543_v24, %v1975_v51  ;;  %vm607_vm1 = vcmp.eq.s32.totalorder %v2543_v24, %v1981_v55 }
  0xc7   : > { %vm361_vm2 = vcmp.eq.s32.totalorder %v258_v2, %v1969_v35  ;;  %vm638_vm3 = vcmp.eq.s32.totalorder %v258_v2, %v1972_v47  ;;  %vm917_vm4 = vcmp.eq.s32.totalorder %v258_v2, %v1996_v62  ;;  %vm1194_vm5 = vcmp.eq.s32.totalorder %v258_v2, %v1999_v63 }
  0xc8   : > { %1473 = vmatpush1.msra.mxu1 %v1374_v39  ;;  %v1066_v44 = vadd.f32 %v986_v33, %v787_v43  ;;  %v460_v56 = vsel %vm361_vm2, %v1950_v27, 0.0  ;;  %v737_v41 = vsel %vm638_vm3, %v1953_v28, 0.0  ;;  %v1016_v15 = vsel %vm917_vm4, %v1961_v38, 0.0 }
  0xc9   : > { %v817_v46 = vadd.f32 %v737_v41, %v460_v56  ;;  %v1293_v30 = vsel %vm1194_vm5, %v1956_v31, 0.0  ;;  %v429_v52 = vsel %vm330_vm0, %v1965_v45, 0.0  ;;  %v706_v54 = vsel %vm607_vm1, %v1991_v60, 0.0 }
  0xca   : > { %v1343_v14 = vadd.f32 %v1263_v20, %v1066_v44  ;;  %v786_v53 = vadd.f32 %v706_v54, %v429_v52  ;;  %vm886_vm6 = vcmp.eq.s32.totalorder %v2543_v24, %v2005_v4  ;;  %vm1163_vm7 = vcmp.eq.s32.totalorder %v2543_v24, %v2033_v23 }
  0xcb   : > { %v1096_v59 = vadd.f32 %v1016_v15, %v817_v46  ;;  %v985_v25 = vsel %vm886_vm6, %v2018_v13, 0.0  ;;  %v1262_v61 = vsel %vm1163_vm7, %v2036_v1, 0.0  ;;  %vm360_vm8 = vcmp.eq.s32.totalorder %v258_v2, %v1975_v51 }
  0xcc   : > { %1433 = vmatprep.subr.mxu0 %v1343_v14  ;;  %v1065_v57 = vadd.f32 %v985_v25, %v786_v53  ;;  %v459_v34 = vsel %vm360_vm8, %v1965_v45, 0.0  ;;  %vm637_vm9 = vcmp.eq.s32.totalorder %v258_v2, %v1981_v55  ;;  %vm916_vm10 = vcmp.eq.s32.totalorder %v258_v2, %v2005_v4 }
  0xcd   : > { %v1373_v42 = vadd.f32 %v1293_v30, %v1096_v59  ;;  %v736_v21 = vsel %vm637_vm9, %v1991_v60, 0.0  ;;  %v1015_v24 = vsel %vm916_vm10, %v2018_v13, 0.0  ;;  %vm1193_vm11 = vcmp.eq.s32.totalorder %v258_v2, %v2033_v23 }
  0xce   : > { %v1342_v16 = vadd.f32 %v1262_v61, %v1065_v57  ;;  %v816_v49 = vadd.f32 %v736_v21, %v459_v34  ;;  %v1292_v0 = vsel %vm1193_vm11, %v2036_v1, 0.0  ;;  %v242_v3 = vadd.s32 176, %v1865_v9 }
  0xcf   : > { %1474 = vmatprep.subr.mxu1 %v1373_v42  ;;  %v257_v5 = vadd.s32 296, %v1865_v9  ;;  %v2645_v6 = vadd.s32 168, %v1865_v9  ;;  %v2648_v17 = vadd.s32 288, %v1865_v9  ;;  %v2651_v7 = vadd.s32 160, %v1865_v9 }
  0xd0   : > { %1434 = vmatpush2.msra.mxu0 %v1342_v16  ;;  %v1095_v32 = vadd.f32 %v1015_v24, %v816_v49  ;;  %vm329_vm12 = vcmp.eq.s32.totalorder %v242_v3, %v1969_v35  ;;  %vm606_vm13 = vcmp.eq.s32.totalorder %v242_v3, %v1972_v47  ;;  %vm885_vm14 = vcmp.eq.s32.totalorder %v242_v3, %v1996_v62 }
  0xd1   : > { %v428_v10 = vsel %vm329_vm12, %v1950_v27, 0.0  ;;  %v705_v11 = vsel %vm606_vm13, %v1953_v28, 0.0  ;;  %v984_v40 = vsel %vm885_vm14, %v1961_v38, 0.0  ;;  %vm1162_vm15 = vcmp.eq.s32.totalorder %v242_v3, %v1999_v63 }
  0xd2   : > { %v1372_v58 = vadd.f32 %v1292_v0, %v1095_v32  ;;  %v785_v12 = vadd.f32 %v705_v11, %v428_v10  ;;  %v1261_v50 = vsel %vm1162_vm15, %v1956_v31, 0.0  ;;  %vm359_vm0 = vcmp.eq.s32.totalorder %v257_v5, %v1969_v35 }
  0xd3   : > { %v458_v18 = vsel %vm359_vm0, %v1950_v27, 0.0  ;;  %vm636_vm1 = vcmp.eq.s32.totalorder %v257_v5, %v1972_v47  ;;  %vm915_vm2 = vcmp.eq.s32.totalorder %v257_v5, %v1996_v62  ;;  %vm1192_vm3 = vcmp.eq.s32.totalorder %v257_v5, %v1999_v63 }
  0xd4   : > { %1475 = vmatpush1.msra.mxu1 %v1372_v58  ;;  %v1064_v19 = vadd.f32 %v984_v40, %v785_v12  ;;  %v735_v48 = vsel %vm636_vm1, %v1953_v28, 0.0  ;;  %v1014_v8 = vsel %vm915_vm2, %v1961_v38, 0.0  ;;  %v1291_v26 = vsel %vm1192_vm3, %v1956_v31, 0.0 }
  0xd5   : > { %v815_v22 = vadd.f32 %v735_v48, %v458_v18  ;;  %vm328_vm4 = vcmp.eq.s32.totalorder %v242_v3, %v1975_v51  ;;  %vm605_vm5 = vcmp.eq.s32.totalorder %v242_v3, %v1981_v55  ;;  %vm884_vm6 = vcmp.eq.s32.totalorder %v242_v3, %v2005_v4 }
  0xd6   : > { %v1341_v29 = vadd.f32 %v1261_v50, %v1064_v19  ;;  %v427_v36 = vsel %vm328_vm4, %v1965_v45, 0.0  ;;  %v704_v37 = vsel %vm605_vm5, %v1991_v60, 0.0  ;;  %v983_v33 = vsel %vm884_vm6, %v2018_v13, 0.0 }
  0xd7   : > { %v1094_v20 = vadd.f32 %v1014_v8, %v815_v22  ;;  %v784_v2 = vadd.f32 %v704_v37, %v427_v36  ;;  %vm1161_vm7 = vcmp.eq.s32.totalorder %v242_v3, %v2033_v23  ;;  %vm358_vm8 = vcmp.eq.s32.totalorder %v257_v5, %v1975_v51 }
  0xd8   : > { %1435 = vmatprep.subr.mxu0 %v1341_v29  ;;  %v1260_v39 = vsel %vm1161_vm7, %v2036_v1, 0.0  ;;  %v457_v43 = vsel %vm358_vm8, %v1965_v45, 0.0  ;;  %vm635_vm9 = vcmp.eq.s32.totalorder %v257_v5, %v1981_v55  ;;  %vm914_vm10 = vcmp.eq.s32.totalorder %v257_v5, %v2005_v4 }
  0xd9   : > { %v1371_v44 = vadd.f32 %v1291_v26, %v1094_v20  ;;  %v1063_v56 = vadd.f32 %v983_v33, %v784_v2  ;;  %v734_v41 = vsel %vm635_vm9, %v1991_v60, 0.0  ;;  %v1013_v15 = vsel %vm914_vm10, %v2018_v13, 0.0 }
  0xda   : > { %v814_v46 = vadd.f32 %v734_v41, %v457_v43  ;;  %vm1191_vm11 = vcmp.eq.s32.totalorder %v257_v5, %v2033_v23  ;;  %vm327_vm12 = vcmp.eq.s32.totalorder %v2645_v6, %v1969_v35  ;;  %vm604_vm13 = vcmp.eq.s32.totalorder %v2645_v6, %v1972_v47 }
  0xdb   : > { %1476 = vmatprep.subr.mxu1 %v1371_v44  ;;  %v1340_v30 = vadd.f32 %v1260_v39, %v1063_v56  ;;  %v1290_v52 = vsel %vm1191_vm11, %v2036_v1, 0.0  ;;  %v426_v54 = vsel %vm327_vm12, %v1950_v27, 0.0  ;;  %v703_v14 = vsel %vm604_vm13, %v1953_v28, 0.0 }
  0xdc   : > { %v1093_v53 = vadd.f32 %v1013_v15, %v814_v46  ;;  %v783_v59 = vadd.f32 %v703_v14, %v426_v54  ;;  %vm883_vm14 = vcmp.eq.s32.totalorder %v2645_v6, %v1996_v62  ;;  %vm1160_vm15 = vcmp.eq.s32.totalorder %v2645_v6, %v1999_v63 }
  0xdd   : > { %1436 = vmatpush2.msra.mxu0 %v1340_v30  ;;  %v982_v25 = vsel %vm883_vm14, %v1961_v38, 0.0  ;;  %v1259_v61 = vsel %vm1160_vm15, %v1956_v31, 0.0  ;;  %vm357_vm0 = vcmp.eq.s32.totalorder %v2648_v17, %v1969_v35  ;;  %vm634_vm1 = vcmp.eq.s32.totalorder %v2648_v17, %v1972_v47 }
  0xde   : > { %v1370_v57 = vadd.f32 %v1290_v52, %v1093_v53  ;;  %v1062_v34 = vadd.f32 %v982_v25, %v783_v59  ;;  %v456_v42 = vsel %vm357_vm0, %v1950_v27, 0.0  ;;  %v733_v21 = vsel %vm634_vm1, %v1953_v28, 0.0 }
  0xdf   : > { %v813_v24 = vadd.f32 %v733_v21, %v456_v42  ;;  %vm913_vm2 = vcmp.eq.s32.totalorder %v2648_v17, %v1996_v62  ;;  %vm1190_vm3 = vcmp.eq.s32.totalorder %v2648_v17, %v1999_v63  ;;  %vm326_vm4 = vcmp.eq.s32.totalorder %v2645_v6, %v1975_v51 }
  0xe0   : > { %1477 = vmatpush1.msra.mxu1 %v1370_v57  ;;  %v1339_v16 = vadd.f32 %v1259_v61, %v1062_v34  ;;  %v1012_v49 = vsel %vm913_vm2, %v1961_v38, 0.0  ;;  %v1289_v0 = vsel %vm1190_vm3, %v1956_v31, 0.0  ;;  %v425_v3 = vsel %vm326_vm4, %v1965_v45, 0.0 }
  0xe1   : > { %v1092_v5 = vadd.f32 %v1012_v49, %v813_v24  ;;  %vm603_vm5 = vcmp.eq.s32.totalorder %v2645_v6, %v1981_v55  ;;  %vm882_vm6 = vcmp.eq.s32.totalorder %v2645_v6, %v2005_v4  ;;  %vm1159_vm7 = vcmp.eq.s32.totalorder %v2645_v6, %v2033_v23 }
  0xe2   : > { %1437 = vmatprep.subr.mxu0 %v1339_v16  ;;  %v702_v32 = vsel %vm603_vm5, %v1991_v60, 0.0  ;;  %v981_v10 = vsel %vm882_vm6, %v2018_v13, 0.0  ;;  %v1258_v11 = vsel %vm1159_vm7, %v2036_v1, 0.0  ;;  %vm356_vm8 = vcmp.eq.s32.totalorder %v2648_v17, %v1975_v51 }
  0xe3   : > { %v1369_v40 = vadd.f32 %v1289_v0, %v1092_v5  ;;  %v782_v58 = vadd.f32 %v702_v32, %v425_v3  ;;  %v455_v12 = vsel %vm356_vm8, %v1965_v45, 0.0  ;;  %vm633_vm9 = vcmp.eq.s32.totalorder %v2648_v17, %v1981_v55 }
  0xe4   : > { %v732_v50 = vsel %vm633_vm9, %v1991_v60, 0.0  ;;  %vm912_vm10 = vcmp.eq.s32.totalorder %v2648_v17, %v2005_v4  ;;  %vm1189_vm11 = vcmp.eq.s32.totalorder %v2648_v17, %v2033_v23  ;;  %vm325_vm12 = vcmp.eq.s32.totalorder %v2651_v7, %v1969_v35 }
  0xe5   : > { %1478 = vmatprep.subr.mxu1 %v1369_v40  ;;  %v1061_v6 = vadd.f32 %v981_v10, %v782_v58  ;;  %v812_v18 = vadd.f32 %v732_v50, %v455_v12  ;;  %v1011_v19 = vsel %vm912_vm10, %v2018_v13, 0.0  ;;  %v1288_v48 = vsel %vm1189_vm11, %v2036_v1, 0.0 }
  0xe6   : > { %v424_v8 = vsel %vm325_vm12, %v1950_v27, 0.0  ;;  %vm602_vm13 = vcmp.eq.s32.totalorder %v2651_v7, %v1972_v47  ;;  %vm881_vm14 = vcmp.eq.s32.totalorder %v2651_v7, %v1996_v62  ;;  %vm1158_vm15 = vcmp.eq.s32.totalorder %v2651_v7, %v1999_v63 }
  0xe7   : > { %v1338_v17 = vadd.f32 %v1258_v11, %v1061_v6  ;;  %v1091_v26 = vadd.f32 %v1011_v19, %v812_v18  ;;  %v701_v22 = vsel %vm602_vm13, %v1953_v28, 0.0  ;;  %v980_v29 = vsel %vm881_vm14, %v1961_v38, 0.0 }
  0xe8   : > { %v781_v36 = vadd.f32 %v701_v22, %v424_v8  ;;  %v1257_v37 = vsel %vm1158_vm15, %v1956_v31, 0.0  ;;  %v255_v33 = vadd.s32 280, %v1865_v9  ;;  %vm324_vm0 = vcmp.eq.s32.totalorder %v2651_v7, %v1975_v51 }
  0xe9   : > { %1438 = vmatpush2.msra.mxu0 %v1338_v17  ;;  %v1368_v20 = vadd.f32 %v1288_v48, %v1091_v26  ;;  %v423_v2 = vsel %vm324_vm0, %v1965_v45, 0.0  ;;  %vm601_vm1 = vcmp.eq.s32.totalorder %v2651_v7, %v1981_v55  ;;  %vm880_vm2 = vcmp.eq.s32.totalorder %v2651_v7, %v2005_v4 }
  0xea   : > { %v1060_v39 = vadd.f32 %v980_v29, %v781_v36  ;;  %vm355_vm3 = vcmp.eq.s32.totalorder %v255_v33, %v1969_v35  ;;  %vm632_vm4 = vcmp.eq.s32.totalorder %v255_v33, %v1972_v47  ;;  %vm911_vm5 = vcmp.eq.s32.totalorder %v255_v33, %v1996_v62 }
  0xeb   : > { %1479 = vmatpush1.msra.mxu1 %v1368_v20  ;;  %v454_v43 = vsel %vm355_vm3, %v1950_v27, 0.0  ;;  %v731_v44 = vsel %vm632_vm4, %v1953_v28, 0.0  ;;  %v1010_v56 = vsel %vm911_vm5, %v1961_v38, 0.0  ;;  %vm1188_vm6 = vcmp.eq.s32.totalorder %v255_v33, %v1999_v63 }
  0xec   : > { %v1337_v41 = vadd.f32 %v1257_v37, %v1060_v39  ;;  %v811_v15 = vadd.f32 %v731_v44, %v454_v43  ;;  %v1287_v46 = vsel %vm1188_vm6, %v1956_v31, 0.0  ;;  %v700_v30 = vsel %vm601_vm1, %v1991_v60, 0.0 }
  0xed   : > { %v780_v52 = vadd.f32 %v700_v30, %v423_v2  ;;  %v979_v54 = vsel %vm880_vm2, %v2018_v13, 0.0  ;;  %vm1157_vm7 = vcmp.eq.s32.totalorder %v2651_v7, %v2033_v23  ;;  %vm354_vm8 = vcmp.eq.s32.totalorder %v255_v33, %v1975_v51 }
  0xee   : > { %1439 = vmatprep.subr.mxu0 %v1337_v41  ;;  %v1090_v14 = vadd.f32 %v1010_v56, %v811_v15  ;;  %v1256_v53 = vsel %vm1157_vm7, %v2036_v1, 0.0  ;;  %v453_v59 = vsel %vm354_vm8, %v1965_v45, 0.0  ;;  %vm631_vm9 = vcmp.eq.s32.totalorder %v255_v33, %v1981_v55 }
  0xef   : > { %v1059_v25 = vadd.f32 %v979_v54, %v780_v52  ;;  %v730_v61 = vsel %vm631_vm9, %v1991_v60, 0.0  ;;  %vm910_vm10 = vcmp.eq.s32.totalorder %v255_v33, %v2005_v4  ;;  %vm1187_vm11 = vcmp.eq.s32.totalorder %v255_v33, %v2033_v23 }
  0xf0   : > { %v1367_v57 = vadd.f32 %v1287_v46, %v1090_v14  ;;  %v810_v34 = vadd.f32 %v730_v61, %v453_v59  ;;  %v1009_v7 = vsel %vm910_vm10, %v2018_v13, 0.0  ;;  %v1286_v42 = vsel %vm1187_vm11, %v2036_v1, 0.0 }
  0xf1   : > { %v1336_v21 = vadd.f32 %v1256_v53, %v1059_v25  ;;  %v239_v24 = vadd.s32 152, %v1865_v9  ;;  %v254_v16 = vadd.s32 272, %v1865_v9  ;;  %v2777_v49 = vadd.s32 144, %v1865_v9 }
  0xf2   : > { %1480 = vmatprep.subr.mxu1 %v1367_v57  ;;  %v1089_v0 = vadd.f32 %v1009_v7, %v810_v34  ;;  %v2780_v3 = vadd.s32 264, %v1865_v9  ;;  %v2783_v5 = vadd.s32 136, %v1865_v9  ;;  %v2786_v32 = vadd.s32 256, %v1865_v9 }
  0xf3   : > { %1440 = vmatpush2.msra.mxu0 %v1336_v21  ;;  %vm323_vm12 = vcmp.eq.s32.totalorder %v239_v24, %v1969_v35  ;;  %vm600_vm13 = vcmp.eq.s32.totalorder %v239_v24, %v1972_v47  ;;  %vm879_vm14 = vcmp.eq.s32.totalorder %v239_v24, %v1996_v62  ;;  %vm1156_vm15 = vcmp.eq.s32.totalorder %v239_v24, %v1999_v63 }
  0xf4   : > { %v1366_v10 = vadd.f32 %v1286_v42, %v1089_v0  ;;  %v422_v11 = vsel %vm323_vm12, %v1950_v27, 0.0  ;;  %v699_v40 = vsel %vm600_vm13, %v1953_v28, 0.0  ;;  %v978_v58 = vsel %vm879_vm14, %v1961_v38, 0.0 }
  0xf5   : > { %v779_v12 = vadd.f32 %v699_v40, %v422_v11  ;;  %v1255_v50 = vsel %vm1156_vm15, %v1956_v31, 0.0  ;;  %vm353_vm0 = vcmp.eq.s32.totalorder %v254_v16, %v1969_v35  ;;  %vm630_vm1 = vcmp.eq.s32.totalorder %v254_v16, %v1972_v47 }
  0xf6   : > { %1481 = vmatpush1.msra.mxu1 %v1366_v10  ;;  %v452_v6 = vsel %vm353_vm0, %v1950_v27, 0.0  ;;  %v729_v18 = vsel %vm630_vm1, %v1953_v28, 0.0  ;;  %vm909_vm2 = vcmp.eq.s32.totalorder %v254_v16, %v1996_v62  ;;  %vm1186_vm3 = vcmp.eq.s32.totalorder %v254_v16, %v1999_v63 }
  0xf7   : > { %v1058_v19 = vadd.f32 %v978_v58, %v779_v12  ;;  %v809_v48 = vadd.f32 %v729_v18, %v452_v6  ;;  %v1008_v8 = vsel %vm909_vm2, %v1961_v38, 0.0  ;;  %v1285_v17 = vsel %vm1186_vm3, %v1956_v31, 0.0 }
  0xf8   : > { %vm322_vm4 = vcmp.eq.s32.totalorder %v239_v24, %v1975_v51  ;;  %vm599_vm5 = vcmp.eq.s32.totalorder %v239_v24, %v1981_v55  ;;  %vm878_vm6 = vcmp.eq.s32.totalorder %v239_v24, %v2005_v4  ;;  %vm1155_vm7 = vcmp.eq.s32.totalorder %v239_v24, %v2033_v23 }
  0xf9   : > { %v1335_v26 = vadd.f32 %v1255_v50, %v1058_v19  ;;  %v1088_v22 = vadd.f32 %v1008_v8, %v809_v48  ;;  %v421_v29 = vsel %vm322_vm4, %v1965_v45, 0.0  ;;  %v698_v36 = vsel %vm599_vm5, %v1991_v60, 0.0 }
  0xfa   : > { %v778_v37 = vadd.f32 %v698_v36, %v421_v29  ;;  %v977_v33 = vsel %vm878_vm6, %v2018_v13, 0.0  ;;  %v1254_v20 = vsel %vm1155_vm7, %v2036_v1, 0.0  ;;  %vm352_vm8 = vcmp.eq.s32.totalorder %v254_v16, %v1975_v51 }
  0xfb   : > { %1441 = vmatprep.subr.mxu0 %v1335_v26  ;;  %v1365_v2 = vadd.f32 %v1285_v17, %v1088_v22  ;;  %v451_v39 = vsel %vm352_vm8, %v1965_v45, 0.0  ;;  %vm629_vm9 = vcmp.eq.s32.totalorder %v254_v16, %v1981_v55  ;;  %vm908_vm10 = vcmp.eq.s32.totalorder %v254_v16, %v2005_v4 }
  0xfc   : > { %v1057_v43 = vadd.f32 %v977_v33, %v778_v37  ;;  %v728_v44 = vsel %vm629_vm9, %v1991_v60, 0.0  ;;  %v1007_v56 = vsel %vm908_vm10, %v2018_v13, 0.0  ;;  %vm1185_vm11 = vcmp.eq.s32.totalorder %v254_v16, %v2033_v23 }
  0xfd   : > { %1482 = vmatprep.subr.mxu1 %v1365_v2  ;;  %v808_v41 = vadd.f32 %v728_v44, %v451_v39  ;;  %v1284_v15 = vsel %vm1185_vm11, %v2036_v1, 0.0  ;;  %vm321_vm12 = vcmp.eq.s32.totalorder %v2777_v49, %v1969_v35  ;;  %vm598_vm13 = vcmp.eq.s32.totalorder %v2777_v49, %v1972_v47 }
  0xfe   : > { %v1334_v46 = vadd.f32 %v1254_v20, %v1057_v43  ;;  %v420_v30 = vsel %vm321_vm12, %v1950_v27, 0.0  ;;  %v697_v52 = vsel %vm598_vm13, %v1953_v28, 0.0  ;;  %vm877_vm14 = vcmp.eq.s32.totalorder %v2777_v49, %v1996_v62 }
  0xff   : > { %v1087_v54 = vadd.f32 %v1007_v56, %v808_v41  ;;  %v777_v14 = vadd.f32 %v697_v52, %v420_v30  ;;  %v976_v53 = vsel %vm877_vm14, %v1961_v38, 0.0  ;;  %vm1154_vm15 = vcmp.eq.s32.totalorder %v2777_v49, %v1999_v63 }
 0x100   : > { %1442 = vmatpush2.msra.mxu0 %v1334_v46  ;;  %v1253_v59 = vsel %vm1154_vm15, %v1956_v31, 0.0  ;;  %vm351_vm0 = vcmp.eq.s32.totalorder %v2780_v3, %v1969_v35  ;;  %vm628_vm1 = vcmp.eq.s32.totalorder %v2780_v3, %v1972_v47  ;;  %vm907_vm2 = vcmp.eq.s32.totalorder %v2780_v3, %v1996_v62 }
 0x101   : > { %v1364_v25 = vadd.f32 %v1284_v15, %v1087_v54  ;;  %v1056_v61 = vadd.f32 %v976_v53, %v777_v14  ;;  %v450_v57 = vsel %vm351_vm0, %v1950_v27, 0.0  ;;  %v727_v34 = vsel %vm628_vm1, %v1953_v28, 0.0 }
 0x102   : > { %v807_v7 = vadd.f32 %v727_v34, %v450_v57  ;;  %v1006_v42 = vsel %vm907_vm2, %v1961_v38, 0.0  ;;  %vm1184_vm3 = vcmp.eq.s32.totalorder %v2780_v3, %v1999_v63  ;;  %vm320_vm4 = vcmp.eq.s32.totalorder %v2777_v49, %v1975_v51 }
 0x103   : > { %1483 = vmatpush1.msra.mxu1 %v1364_v25  ;;  %v1333_v21 = vadd.f32 %v1253_v59, %v1056_v61  ;;  %v1283_v24 = vsel %vm1184_vm3, %v1956_v31, 0.0  ;;  %v419_v16 = vsel %vm320_vm4, %v1965_v45, 0.0  ;;  %vm597_vm5 = vcmp.eq.s32.totalorder %v2777_v49, %v1981_v55 }
 0x104   : > { %v1086_v0 = vadd.f32 %v1006_v42, %v807_v7  ;;  %v696_v10 = vsel %vm597_vm5, %v1991_v60, 0.0  ;;  %vm876_vm6 = vcmp.eq.s32.totalorder %v2777_v49, %v2005_v4  ;;  %vm1153_vm7 = vcmp.eq.s32.totalorder %v2777_v49, %v2033_v23 }
 0x105   : > { %1443 = vmatprep.subr.mxu0 %v1333_v21  ;;  %v776_v11 = vadd.f32 %v696_v10, %v419_v16  ;;  %v975_v40 = vsel %vm876_vm6, %v2018_v13, 0.0  ;;  %v1252_v58 = vsel %vm1153_vm7, %v2036_v1, 0.0  ;;  %vm350_vm8 = vcmp.eq.s32.totalorder %v2780_v3, %v1975_v51 }
 0x106   : > { %v1363_v12 = vadd.f32 %v1283_v24, %v1086_v0  ;;  %v449_v50 = vsel %vm350_vm8, %v1965_v45, 0.0  ;;  %vm627_vm9 = vcmp.eq.s32.totalorder %v2780_v3, %v1981_v55  ;;  %vm906_vm10 = vcmp.eq.s32.totalorder %v2780_v3, %v2005_v4 }
 0x107   : > { %v1055_v6 = vadd.f32 %v975_v40, %v776_v11  ;;  %v726_v49 = vsel %vm627_vm9, %v1991_v60, 0.0  ;;  %v1005_v18 = vsel %vm906_vm10, %v2018_v13, 0.0  ;;  %vm1183_vm11 = vcmp.eq.s32.totalorder %v2780_v3, %v2033_v23 }
 0x108   : > { %1484 = vmatprep.subr.mxu1 %v1363_v12  ;;  %v806_v19 = vadd.f32 %v726_v49, %v449_v50  ;;  %v1282_v48 = vsel %vm1183_vm11, %v2036_v1, 0.0  ;;  %vm319_vm12 = vcmp.eq.s32.totalorder %v2783_v5, %v1969_v35  ;;  %vm596_vm13 = vcmp.eq.s32.totalorder %v2783_v5, %v1972_v47 }
 0x109   : > { %v1332_v8 = vadd.f32 %v1252_v58, %v1055_v6  ;;  %v418_v17 = vsel %vm319_vm12, %v1950_v27, 0.0  ;;  %v695_v26 = vsel %vm596_vm13, %v1953_v28, 0.0  ;;  %vm875_vm14 = vcmp.eq.s32.totalorder %v2783_v5, %v1996_v62 }
 0x10a   : > { %v1085_v22 = vadd.f32 %v1005_v18, %v806_v19  ;;  %v775_v3 = vadd.f32 %v695_v26, %v418_v17  ;;  %v974_v29 = vsel %vm875_vm14, %v1961_v38, 0.0  ;;  %vm1152_vm15 = vcmp.eq.s32.totalorder %v2783_v5, %v1999_v63 }
 0x10b   : > { %1444 = vmatpush2.msra.mxu0 %v1332_v8  ;;  %v1251_v36 = vsel %vm1152_vm15, %v1956_v31, 0.0  ;;  %vm349_vm0 = vcmp.eq.s32.totalorder %v2786_v32, %v1969_v35  ;;  %vm626_vm1 = vcmp.eq.s32.totalorder %v2786_v32, %v1972_v47  ;;  %vm905_vm2 = vcmp.eq.s32.totalorder %v2786_v32, %v1996_v62 }
 0x10c   : > { %v1362_v37 = vadd.f32 %v1282_v48, %v1085_v22  ;;  %v1054_v33 = vadd.f32 %v974_v29, %v775_v3  ;;  %v448_v20 = vsel %vm349_vm0, %v1950_v27, 0.0  ;;  %v725_v2 = vsel %vm626_vm1, %v1953_v28, 0.0 }
 0x10d   : > { %v805_v39 = vadd.f32 %v725_v2, %v448_v20  ;;  %v1004_v43 = vsel %vm905_vm2, %v1961_v38, 0.0  ;;  %vm1182_vm3 = vcmp.eq.s32.totalorder %v2786_v32, %v1999_v63  ;;  %vm318_vm4 = vcmp.eq.s32.totalorder %v2783_v5, %v1975_v51 }
 0x10e   : > { %1485 = vmatpush1.msra.mxu1 %v1362_v37  ;;  %v1331_v44 = vadd.f32 %v1251_v36, %v1054_v33  ;;  %v1281_v56 = vsel %vm1182_vm3, %v1956_v31, 0.0  ;;  %v417_v41 = vsel %vm318_vm4, %v1965_v45, 0.0  ;;  %vm595_vm5 = vcmp.eq.s32.totalorder %v2783_v5, %v1981_v55 }
 0x10f   : > { %v1084_v15 = vadd.f32 %v1004_v43, %v805_v39  ;;  %v694_v46 = vsel %vm595_vm5, %v1991_v60, 0.0  ;;  %vm874_vm6 = vcmp.eq.s32.totalorder %v2783_v5, %v2005_v4  ;;  %vm1151_vm7 = vcmp.eq.s32.totalorder %v2783_v5, %v2033_v23  ;;  %v1376_v5 = vld [vmem:[%s2980_s1] sm:$0xff] }
 0x110   : > { %1445 = vmatprep.subr.mxu0 %v1331_v44  ;;  %v774_v30 = vadd.f32 %v694_v46, %v417_v41  ;;  %v973_v52 = vsel %vm874_vm6, %v2018_v13, 0.0  ;;  %v1250_v54 = vsel %vm1151_vm7, %v2036_v1, 0.0  ;;  %vm348_vm8 = vcmp.eq.s32.totalorder %v2786_v32, %v1975_v51 }
 0x111   : > { %v1361_v14 = vadd.f32 %v1281_v56, %v1084_v15  ;;  %v447_v53 = vsel %vm348_vm8, %v1965_v45, 0.0  ;;  %vm625_vm9 = vcmp.eq.s32.totalorder %v2786_v32, %v1981_v55  ;;  %vm904_vm10 = vcmp.eq.s32.totalorder %v2786_v32, %v2005_v4 }
 0x112   : > { %v1053_v59 = vadd.f32 %v973_v52, %v774_v30  ;;  %v724_v25 = vsel %vm625_vm9, %v1991_v60, 0.0  ;;  %v1003_v61 = vsel %vm904_vm10, %v2018_v13, 0.0  ;;  %vm1181_vm11 = vcmp.eq.s32.totalorder %v2786_v32, %v2033_v23 }
 0x113   : > { %1486 = vmatprep.subr.mxu1 %v1361_v14  ;;  %v804_v57 = vadd.f32 %v724_v25, %v447_v53  ;;  %v236_v34 = vadd.s32 128, %v1865_v9  ;;  %v1280_v42 = vsel %vm1181_vm11, %v2036_v1, 0.0  ;;  %vm1382_vm12 = vcmask 523264  }
 0x114   : > { %v1330_v7 = vadd.f32 %v1250_v54, %v1053_v59  ;;  %v1380_v21 = vcombine.high %v1376_v5, %v1376_v5 }
 0x115   : > { %v1083_v24 = vadd.f32 %v1003_v61, %v804_v57  ;;  %vm317_vm13 = vcmp.eq.s32.totalorder %v236_v34, %v1969_v35  ;;  %vm594_vm14 = vcmp.eq.s32.totalorder %v236_v34, %v1972_v47  ;;  %vm873_vm15 = vcmp.eq.s32.totalorder %v236_v34, %v1996_v62  ;;  %v1377_v35 = vld [vmem:[%s2980_s1 + $0x8] sm:$0xf] }
 0x116   : > { %1446 = vmatpush2.msra.mxu0 %v1330_v7  ;;  %v416_v16 = vsel %vm317_vm13, %v1950_v27, 0.0  ;;  %v693_v32 = vsel %vm594_vm14, %v1953_v28, 0.0  ;;  %v972_v0 = vsel %vm873_vm15, %v1961_v38, 0.0  ;;  %vm1150_vm0 = vcmp.eq.s32.totalorder %v236_v34, %v1999_v63  ;;  %1449 = vmatprep.mubr.f32.mxu0 %v1380_v21 }
 0x117   : > { %v1360_v9 = vadd.f32 %v1280_v42, %v1083_v24  ;;  %v773_v10 = vadd.f32 %v693_v32, %v416_v16  ;;  %v1249_v11 = vsel %vm1150_vm0, %v1956_v31, 0.0  ;;  %vm316_vm1 = vcmp.eq.s32.totalorder %v236_v34, %v1975_v51 }
 0x118   : > { %v415_v47 = vsel %vm316_vm1, %v1965_v45, 0.0  ;;  %vm593_vm2 = vcmp.eq.s32.totalorder %v236_v34, %v1981_v55  ;;  %vm872_vm3 = vcmp.eq.s32.totalorder %v236_v34, %v2005_v4  ;;  %vm1149_vm4 = vcmp.eq.s32.totalorder %v236_v34, %v2033_v23 }
 0x119   : > { %1487 = vmatpush1.msra.mxu1 %v1360_v9  ;;  %v1052_v27 = vadd.f32 %v972_v0, %v773_v10  ;;  %v692_v28 = vsel %vm593_vm2, %v1991_v60, 0.0  ;;  %v971_v31 = vsel %vm872_vm3, %v2018_v13, 0.0  ;;  %v1248_v45 = vsel %vm1149_vm4, %v2036_v1, 0.0 }
 0x11a   : > { %1635 = vmatmul.mubr.msk.f32.vlgmr.msra.gmra.mxu1 %vm1382_vm12, %v1377_v35  ;;  %v772_v38 = vadd.f32 %v692_v28, %v415_v47 }
 0x11b   : > { %v1329_v51 = vadd.f32 %v1249_v11, %v1052_v27 }
 0x11c   : > { %v1051_v62 = vadd.f32 %v971_v31, %v772_v38 }
 0x11d   : > { %1447 = vmatprep.subr.mxu0 %v1329_v51 }
 0x11e   : > { %v1328_v55 = vadd.f32 %v1248_v45, %v1051_v62 }
 0x120   : > { %1448 = vmatpush2.msra.mxu0 %v1328_v55 }
 0x121   : > { %1450 = vmatmul.mubr.f32.vlgmr.msra.gmra.mxu0 %v1376_v5 }
 0x1da   : > { %v1522_v63 = vpop.f32.mrf.mxu1 }
 0x1dc   : > { %v1524_v60 = vpop.f32.mrf.mxu1 }
 0x1e1   : > { %v1451_v4 = vpop.f32.mrf.mxu0 }
 0x1e2   : > { %v1523_v13 = vadd.f32 %v1522_v63, %v1451_v4 }
 0x1e3   : > { %v1453_v23 = vpop.f32.mrf.mxu0 }
 0x1e4   : > { %v1525_v40 = vadd.f32 %v1524_v60, %v1453_v23 }
 0x1e6   : > { %v1529_v58 = vcombine.low %v1523_v13, %v1525_v40 }
 0x1e8   : > { %1531 = vst [vmem:[%s161_s7] sm:$0xff] %v1529_v58 }
 0x1e9   : > { %1720 = shalt.err (!%p1717_p5)
}
 0x1ea   : > { %s1721_s26 = scalar_lea.hbm %s1547_s18, 128  ;;  %s1725_s29 = scalar_lea.hbm %s2981_s2, 256 }
 0x1eb   : > { %p1722_p6 = scmp.ne.s32.totalorder %s1547_s18, %s1721_s26  ;;  %p1726_p10 = scmp.lt.s32.totalorder %s1547_s18, %s2981_s2 }
 0x1ec   : > { %p1727_p11 = scmp.lt.s32.totalorder %s1725_s29, %s1721_s26 }
 0x1ed   : > { %p1723_p7 = pnand %p1722_p6, %p1843_p4 }
 0x1ee   : > { %p1728_p12 = por %p1727_p11, %p1726_p10 }
 0x1ef   : > { %p1724_p9 = pneg %p1723_p7 }
 0x1f1   : > { %p1729_p13 = pnand %p1728_p12, %p1724_p9 }
 0x1f3   : > { %1732 = shalt.err (!%p1729_p13)
}
 0x1f4   : > { %1649 = dma.vmem_to_hbm [thread:$0]  (%p1843_p4), %s1550_s8, 128, %s1547_s18, %s1533_s20  }
 0x1f5 PF: > { %p1655_p0 = scmp.ge.s32.totalorder %s1783_s14, 2  ;;  %s1561_s4 = sand.u32 1, %s1763_s9  }
 0x1f6   : > { %s1562_s5 = scalar_lea.sflag [#allocation3], %s1561_s4 }
 0x1f7   : > { %p1652_p1 = pnand %p1655_p0, %p1850_p8 }
 0x1f9   : > { %p1653_p2 = pneg %p1652_p1 }
 0x1fb   : > { %1758 = dma.done.wait (%p1653_p2), %s1562_s5, 128  }
 0x1fc   : > { %1760 = vsyncadd (%p1653_p2), %s1562_s5, 4294967168  ;;  %s15_s14 = sadd.s32 1, %s1783_s14   ;;  %s2984_s9 = smov %s1767_s10 }
 0x1fd   : > { %p12_p3 = scmp.ge.s32.totalorder %s15_s14, 4   ;;  %s2985_s10 = smov %s1771_s11 }
 0x1fe   : > { %s2986_s11 = smov %s1856_s22  ;;  %s2987_s12 = smov %s1779_s13 }
 0x1ff   : > { %s2988_s13 = smov %s2990_s17  ;;  %14 = sbr.rel (!%p12_p3) target bundleno = 4 (0x4), region = 63 }
 0x204   :  { %1567 = vsyncpa [#allocation3], 1 }
 0x205   :  { %1569 = vsyncpa [#allocation3 + $0x1], 1 }

</bundles_post_ra>
